<compile_context>
chip_gen: v6e
topology: v6e:2x2x1
jax: 0.10.0
libtpu: 0.0.40
codegen_flags: <defaults>
</compile_context>

<pallas_src>
import functools
import math

import jax
import jax.numpy as jnp
from jax import lax
from jax.experimental import pallas as pl
from jax.experimental.pallas import tpu as pltpu

EPS = 1e-5                       # config.norm_epsilon

# Tile targets.  Chosen to stay comfortably inside v7x's 64 MiB VMEM while
# remaining MXU-friendly; on v5e/v6e (128 MiB VMEM) TN_MAX/TK_MAX can be
# raised to 1024 for more arithmetic intensity.
TM_MAX = 256                     # LHS rows per tile (multiple of 16: bf16 sublanes)
TN_MAX = 512                     # output columns per tile (multiple of 128 lanes)
TK_MAX = 512                     # contraction tile (non-LN matmuls)
TQ_MAX = 256                     # attention query rows per tile
TKV_MAX = 512                    # attention kv rows per tile
VMEM_LIMIT = 64 * 1024 * 1024


def _round_up(x, m):
    return ((x + m - 1) // m) * m


def _pad2(a, rows, cols):
    r, c = a.shape
    if r == rows and c == cols:
        return a
    return jnp.pad(a, ((0, rows - r), (0, cols - c)))


# ----------------------------------------------------------------------------
# Fused matmul: y = act(LN(x) @ W + b) [+ residual]
# ----------------------------------------------------------------------------
def _mm2d_kernel(*refs, activation, has_ln, has_res, eps):
    """Single-K-tile matmul (grid = (i, j)).  LN is cached at j == 0."""
    idx = 0
    x_ref = refs[idx]; idx += 1
    w_ref = refs[idx]; idx += 1
    b_ref = refs[idx]; idx += 1
    if has_ln:
        g_ref = refs[idx]; idx += 1
        bt_ref = refs[idx]; idx += 1
    if has_res:
        r_ref = refs[idx]; idx += 1
    o_ref = refs[idx]; idx += 1
    if has_ln:
        xn_ref = refs[idx]; idx += 1

    if has_ln:
        # LayerNorm once per row tile: compute at the first column tile and
        # reuse the cached normalized tile for every j (j axis is "arbitrary"
        # so the cache is valid under megacore sharding).
        @pl.when(pl.program_id(1) == 0)
        def _ln():
            xf = x_ref[...].astype(jnp.float32)
            mu = jnp.mean(xf, axis=-1, keepdims=True)
            var = jnp.mean(jnp.square(xf - mu), axis=-1, keepdims=True)
            xf = (xf - mu) * lax.rsqrt(var + eps)
            xn_ref[...] = (xf * g_ref[...] + bt_ref[...]).astype(xn_ref.dtype)
        lhs = xn_ref[...]
    else:
        lhs = x_ref[...]

    y = jnp.dot(lhs, w_ref[...], preferred_element_type=jnp.float32)
    y = y + b_ref[...].astype(jnp.float32)
    if activation == "gelu":
        # TODO(synk): PyTorch nn.GELU defaults to exact erf; tanh approximation used here.
        y = jax.nn.gelu(y)
    if has_res:
        y = y + r_ref[...].astype(jnp.float32)
    o_ref[...] = y.astype(o_ref.dtype)


def _mm3d_kernel(*refs, activation, has_res):
    """K-tiled matmul with a persistent f32 accumulator (grid = (i, j, k))."""
    idx = 0
    x_ref = refs[idx]; idx += 1
    w_ref = refs[idx]; idx += 1
    b_ref = refs[idx]; idx += 1
    if has_res:
        r_ref = refs[idx]; idx += 1
    o_ref = refs[idx]; idx += 1
    acc_ref = refs[idx]

    k = pl.program_id(2)

    @pl.when(k == 0)
    def _init():
        acc_ref[...] = jnp.zeros_like(acc_ref)

    acc_ref[...] += jnp.dot(x_ref[...], w_ref[...],
                            preferred_element_type=jnp.float32)

    @pl.when(k == pl.num_programs(2) - 1)
    def _finalize():
        y = acc_ref[...] + b_ref[...].astype(jnp.float32)
        if activation == "gelu":
            # TODO(synk): exact-erf GELU not used (see _mm2d_kernel).
            y = jax.nn.gelu(y)
        if has_res:
            y = y + r_ref[...].astype(jnp.float32)
        o_ref[...] = y.astype(o_ref.dtype)


def fused_matmul(x, w, b, *, ln=None, residual=None, activation=None,
                 out_dtype=jnp.bfloat16, eps=EPS):
    """y = act(LN(x) @ w + b) [+ residual].  x:(M,K) w:(K,N) b:(1,N)."""
    M, K = x.shape
    N = w.shape[1]
    has_ln = ln is not None
    has_res = residual is not None

    # Fixed, VMEM-safe tiles; dims that don't fit are padded (never the LN
    # feature dim, which must stay exact for the statistics).
    tm = M if M <= TM_MAX else TM_MAX
    tn = N if N <= TN_MAX else TN_MAX
    tk = K if (has_ln or K <= TK_MAX) else TK_MAX

    Mp = _round_up(M, tm)
    Np = _round_up(N, tn)
    Kp = K if has_ln else _round_up(K, tk)
    nk = Kp // tk

    xp = _pad2(x, Mp, Kp)
    wp = _pad2(w, Kp, Np)
    bp = _pad2(b, 1, Np)
    rp = _pad2(residual, Mp, Np) if has_res else None

    if nk == 1:
        in_specs = [pl.BlockSpec((tm, Kp), lambda i, j: (i, 0)),
                    pl.BlockSpec((Kp, tn), lambda i, j: (0, j)),
                    pl.BlockSpec((1, tn), lambda i, j: (0, j))]
        inputs = [xp, wp, bp]
        if has_ln:
            gamma, beta = ln
            in_specs += [pl.BlockSpec((1, Kp), lambda i, j: (0, 0)),
                         pl.BlockSpec((1, Kp), lambda i, j: (0, 0))]
            inputs += [gamma, beta]
        if has_res:
            in_specs.append(pl.BlockSpec((tm, tn), lambda i, j: (i, j)))
            inputs.append(rp)
        out_spec = pl.BlockSpec((tm, tn), lambda i, j: (i, j))
        scratch = [pltpu.VMEM((tm, Kp), jnp.bfloat16)] if has_ln else []
        grid = (Mp // tm, Np // tn)
        # LN cache requires all j of a given i on one core -> j "arbitrary".
        dims = ("parallel", "arbitrary") if has_ln else ("parallel", "parallel")
        kernel = functools.partial(_mm2d_kernel, activation=activation,
                                   has_ln=has_ln, has_res=has_res, eps=eps)
    else:
        in_specs = [pl.BlockSpec((tm, tk), lambda i, j, k: (i, k)),
                    pl.BlockSpec((tk, tn), lambda i, j, k: (k, j)),
                    pl.BlockSpec((1, tn), lambda i, j, k: (0, j))]
        inputs = [xp, wp, bp]
        if has_res:
            in_specs.append(pl.BlockSpec((tm, tn), lambda i, j, k: (i, j)))
            inputs.append(rp)
        out_spec = pl.BlockSpec((tm, tn), lambda i, j, k: (i, j))
        scratch = [pltpu.VMEM((tm, tn), jnp.float32)]
        grid = (Mp // tm, Np // tn, nk)
        dims = ("parallel", "parallel", "arbitrary")
        kernel = functools.partial(_mm3d_kernel, activation=activation,
                                   has_res=has_res)

    out = pl.pallas_call(
        kernel,
        out_shape=jax.ShapeDtypeStruct((Mp, Np), out_dtype),
        grid_spec=pltpu.PrefetchScalarGridSpec(
            num_scalar_prefetch=0,
            grid=grid,
            in_specs=in_specs,
            out_specs=out_spec,
            scratch_shapes=scratch,
        ),
        compiler_params=pltpu.CompilerParams(
            dimension_semantics=dims,
            vmem_limit_bytes=VMEM_LIMIT,
        ),
    )(*inputs)

    if (Mp, Np) != (M, N):
        out = out[:M, :N]
    return out


# ----------------------------------------------------------------------------
# Head-major flash attention over a packed (3, B*heads, S, head_dim) slab
# ----------------------------------------------------------------------------
def _flash_attn_kernel(q_ref, k_ref, v_ref, o_ref, m_sc, l_sc, acc_sc, *,
                       scale, causal, tq, tkv, kv_len):
    qi = pl.program_id(1)
    ki = pl.program_id(2)
    nkv = pl.num_programs(2)

    @pl.when(ki == 0)
    def _init():
        m_sc[...] = jnp.full_like(m_sc, -1e30)
        l_sc[...] = jnp.zeros_like(l_sc)
        acc_sc[...] = jnp.zeros_like(acc_sc)

    q_start = qi * tq
    k_start = ki * tkv

    def _step():
        q = q_ref[0, 0] * scale             # fold 1/sqrt(d) into q (exact for 2^k d)
        k = k_ref[0, 0]
        v = v_ref[0, 0]
        s = lax.dot_general(q, k, (((1,), (1,)), ((), ())),
                            preferred_element_type=jnp.float32)   # (tq, tkv)
        mask = None
        if causal:
            row = q_start + lax.broadcasted_iota(jnp.int32, (tq, tkv), 0)
            col = k_start + lax.broadcasted_iota(jnp.int32, (tq, tkv), 1)
            mask = col <= row
        if kv_len is not None:              # padded sequence -> mask pad columns
            col = k_start + lax.broadcasted_iota(jnp.int32, (tq, tkv), 1)
            pad_mask = col < kv_len
            mask = pad_mask if mask is None else jnp.logical_and(mask, pad_mask)
        if mask is not None:
            s = jnp.where(mask, s, -1e30)

        m_prev = m_sc[...]
        m_new = jnp.maximum(m_prev, jnp.max(s, axis=-1, keepdims=True))
        alpha = jnp.exp(m_prev - m_new)
        p = jnp.exp(s - m_new)
        l_sc[...] = alpha * l_sc[...] + jnp.sum(p, axis=-1, keepdims=True)
        acc_sc[...] = alpha * acc_sc[...] + jnp.dot(
            p.astype(v.dtype), v, preferred_element_type=jnp.float32)
        m_sc[...] = m_new

    if causal:
        # Skip KV blocks that lie entirely above the causal diagonal.
        @pl.when(k_start <= q_start + tq - 1)
        def _(): _step()
    else:
        _step()

    @pl.when(ki == nkv - 1)
    def _finalize():
        inv = pl.reciprocal(l_sc[...], approx=True)
        o_ref[0] = (acc_sc[...] * inv).astype(o_ref.dtype)


def flash_attention(qkv, batch, seq, num_heads, causal=True):
    """qkv: (B*S, 3H) fused projection output.  Returns (B*S, H)."""
    B, S = batch, seq
    H = qkv.shape[-1] // 3
    hd = H // num_heads
    scale = 1.0 / math.sqrt(hd)

    # One repack transpose instead of three q/k/v slice copies.
    qkvh = qkv.reshape(B, S, 3, num_heads, hd)
    qkvh = jnp.transpose(qkvh, (2, 0, 3, 1, 4)).reshape(3, B * num_heads, S, hd)

    if S <= TQ_MAX:
        tq = tkv = S
        Sp = S
    else:
        tq, tkv = TQ_MAX, TKV_MAX
        Sp = _round_up(S, TKV_MAX)
    if Sp != S:
        qkvh = jnp.pad(qkvh, ((0, 0), (0, 0), (0, Sp - S), (0, 0)))
    kv_len = S if Sp != S else None

    nh = num_heads
    grid = (B * nh, Sp // tq, Sp // tkv)

    kernel = functools.partial(_flash_attn_kernel, scale=scale, causal=causal,
                               tq=tq, tkv=tkv, kv_len=kv_len)

    out = pl.pallas_call(
        kernel,
        out_shape=jax.ShapeDtypeStruct((B * nh, Sp, hd), qkv.dtype),
        grid_spec=pltpu.PrefetchScalarGridSpec(
            num_scalar_prefetch=0,
            grid=grid,
            in_specs=[
                pl.BlockSpec((1, 1, tq, hd), lambda bh, qi, ki: (0, bh, qi, 0)),
                pl.BlockSpec((1, 1, tkv, hd), lambda bh, qi, ki: (1, bh, ki, 0)),
                pl.BlockSpec((1, 1, tkv, hd), lambda bh, qi, ki: (2, bh, ki, 0)),
            ],
            out_specs=pl.BlockSpec((1, tq, hd), lambda bh, qi, ki: (bh, qi, 0)),
            scratch_shapes=[
                pltpu.VMEM((tq, 1), jnp.float32),    # running max
                pltpu.VMEM((tq, 1), jnp.float32),    # running sum
                pltpu.VMEM((tq, hd), jnp.float32),   # output accumulator
            ],
        ),
        compiler_params=pltpu.CompilerParams(
            dimension_semantics=("parallel", "parallel", "arbitrary"),
            vmem_limit_bytes=VMEM_LIMIT,
        ),
    )(qkvh, qkvh, qkvh)

    if Sp != S:
        out = out[:, :S, :]
    out = out.reshape(B, nh, S, hd).transpose(0, 2, 1, 3).reshape(B * S, H)
    return out


# ----------------------------------------------------------------------------
# Embedding gather: x[b,s] = tok_emb[ids[b,s]] + pos_emb[s]
# (row-block per grid step, manual DMA gather from HBM)
# ----------------------------------------------------------------------------
def _embed_kernel(ids_ref, tok_hbm, pos_ref, o_ref, buf, sems, *, rows, seq_len):
    b = pl.program_id(0)
    j = pl.program_id(1)
    base = b * seq_len + j * rows
    # Issue all row-gather DMAs, then wait (they overlap each other).
    for r in range(rows):
        tid = ids_ref[base + r]
        pltpu.make_async_copy(tok_hbm.at[pl.ds(tid, 1)],
                              buf.at[pl.ds(r, 1)], sems.at[r]).start()
    for r in range(rows):
        pltpu.make_async_copy(tok_hbm.at[pl.ds(0, 1)],
                              buf.at[pl.ds(r, 1)], sems.at[r]).wait()
    o_ref[0] = (buf[...] + pos_ref[0].astype(buf.dtype)).astype(o_ref.dtype)


def embed(input_ids, tok_emb, pos_emb, out_dtype=jnp.bfloat16):
    B, S = input_ids.shape
    V, H = tok_emb.shape
    # Clamp ids: BlockSpec/DMA-driven gathers have no runtime bounds check.
    ids = jnp.clip(input_ids.reshape(-1).astype(jnp.int32), 0, V - 1)

    if S % 16 == 0:
        rows = 16
    elif S % 8 == 0:
        rows = 8
    else:
        rows = S     # short / odd sequences: whole row per step (full-dim block)

    pos = pos_emb[:S].reshape(1, S, H)

    out = pl.pallas_call(
        functools.partial(_embed_kernel, rows=rows, seq_len=S),
        out_shape=jax.ShapeDtypeStruct((B, S, H), out_dtype),
        grid_spec=pltpu.PrefetchScalarGridSpec(
            num_scalar_prefetch=1,            # ids -> SMEM
            grid=(B, S // rows),
            in_specs=[
                pl.BlockSpec(memory_space=pl.ANY),                     # tok_emb (HBM)
                pl.BlockSpec((1, rows, H), lambda b, j, ids: (0, j, 0)),
            ],
            out_specs=pl.BlockSpec((1, rows, H), lambda b, j, ids: (b, j, 0)),
            scratch_shapes=[
                pltpu.VMEM((rows, H), tok_emb.dtype),
                pltpu.SemaphoreType.DMA((rows,)),
            ],
        ),
        compiler_params=pltpu.CompilerParams(
            dimension_semantics=("arbitrary", "arbitrary"),
            vmem_limit_bytes=VMEM_LIMIT,
        ),
    )(ids, tok_emb, pos)
    return out.reshape(B * S, H)


# ----------------------------------------------------------------------------
# Model glue: params, blocks, forward
# ----------------------------------------------------------------------------
def init_params(key, vocab, hidden, max_seq_len, num_heads, num_layers):
    del num_heads  # static config, not part of the param pytree
    keys = jax.random.split(key, 4 + num_layers)

    def nrm(k, shape, dtype=jnp.bfloat16):
        return (0.02 * jax.random.normal(k, shape, dtype=jnp.float32)).astype(dtype)

    params = {
        "tok_emb": nrm(keys[0], (vocab, hidden), jnp.float32),
        "pos_emb": nrm(keys[1], (max_seq_len, hidden), jnp.float32),
        "ln_f_g": jnp.ones((1, hidden), jnp.float32),
        "ln_f_b": jnp.zeros((1, hidden), jnp.float32),
        "w_out": nrm(keys[2], (hidden, vocab)),
        "b_out": jnp.zeros((1, vocab), jnp.float32),
        "blocks": [],
    }
    for l in range(num_layers):
        bk = jax.random.split(keys[4 + l], 4)
        params["blocks"].append({
            "ln1_g": jnp.ones((1, hidden), jnp.float32),
            "ln1_b": jnp.zeros((1, hidden), jnp.float32),
            "w_qkv": nrm(bk[0], (hidden, 3 * hidden)),
            "b_qkv": jnp.zeros((1, 3 * hidden), jnp.float32),
            "w_o": nrm(bk[1], (hidden, hidden)),
            "b_o": jnp.zeros((1, hidden), jnp.float32),
            "ln2_g": jnp.ones((1, hidden), jnp.float32),
            "ln2_b": jnp.zeros((1, hidden), jnp.float32),
            "w_fc1": nrm(bk[2], (hidden, 4 * hidden)),
            "b_fc1": jnp.zeros((1, 4 * hidden), jnp.float32),
            "w_fc2": nrm(bk[3], (4 * hidden, hidden)),
            "b_fc2": jnp.zeros((1, hidden), jnp.float32),
        })
    return params


def transformer_block(x, p, B, S, num_heads, causal):
    # Attention: LN1 fused into the QKV matmul; residual fused into o-proj.
    qkv = fused_matmul(x, p["w_qkv"], p["b_qkv"], ln=(p["ln1_g"], p["ln1_b"]))
    attn = flash_attention(qkv, B, S, num_heads, causal=causal)       # (B*S, H)
    x = fused_matmul(attn, p["w_o"], p["b_o"], residual=x)

    # FFN: LN2 + GELU fused into fc1; residual fused into fc2.
    h = fused_matmul(x, p["w_fc1"], p["b_fc1"],
                     ln=(p["ln2_g"], p["ln2_b"]), activation="gelu")
    x = fused_matmul(h, p["w_fc2"], p["b_fc2"], residual=x)
    return x


def gpt_forward(params, input_ids, num_heads, causal_mask=True):
    """Returns logits of shape (B, S, vocab)."""
    B, S = input_ids.shape
    V, H = params["tok_emb"].shape

    x = embed(input_ids, params["tok_emb"], params["pos_emb"])        # (B*S, H) bf16

    # TODO(synk): dropout treated as identity (eval mode); training RNG dropout not implemented.
    for blk in params["blocks"]:
        x = transformer_block(x, blk, B, S, num_heads, causal_mask)

    # Final LayerNorm fused into the lm-head matmul; logits kept in f32.
    logits = fused_matmul(x, params["w_out"], params["b_out"],
                          ln=(params["ln_f_g"], params["ln_f_b"]),
                          out_dtype=jnp.float32)
    # TODO(synk): target_ids cross-entropy loss branch and generate() loop not implemented.
    return logits.reshape(B, S, V)


if __name__ == "__main__":
    # Small GPTConfig: vocab=64, hidden=32, max_seq_len=16, heads=4, layers=2
    VOCAB, HIDDEN, MAX_SEQ, HEADS, LAYERS = 64, 32, 16, 4, 2
    B, S = 2, 8

    root = jax.random.PRNGKey(0)
    k_params, k_ids = jax.random.split(root)
    params = init_params(k_params, VOCAB, HIDDEN, MAX_SEQ, HEADS, LAYERS)
    input_ids = jax.random.randint(k_ids, (B, S), 0, VOCAB, dtype=jnp.int32)

    fwd = jax.jit(gpt_forward, static_argnames=("num_heads", "causal_mask"))
    logits = fwd(params, input_ids, num_heads=HEADS, causal_mask=True)
    logits = jax.block_until_ready(logits)

    assert logits.shape == (B, S, VOCAB)
    assert bool(jnp.all(jnp.isfinite(logits)))
    print("KERNEL_OK")
</pallas_src>

<mosaic_0001>
module attributes {stable_mosaic.version = 11 : i64} {
  func.func @_mm2d_kernel(%arg0: i32, %arg1: i32, %arg2: memref<16x32xbf16, #tpu.memory_space<vmem>>, %arg3: memref<32x96xbf16, #tpu.memory_space<vmem>>, %arg4: memref<1x96xf32, #tpu.memory_space<vmem>>, %arg5: memref<1x32xf32, #tpu.memory_space<vmem>>, %arg6: memref<1x32xf32, #tpu.memory_space<vmem>>, %arg7: memref<16x96xbf16, #tpu.memory_space<vmem>>, %arg8: memref<16x32xbf16, #tpu.memory_space<vmem>>) attributes {dimension_semantics = [#tpu.dimension_semantics<parallel>, #tpu.dimension_semantics<arbitrary>], iteration_bounds = array<i64: 1, 1>, scalar_prefetch = 0 : i64, scratch_operands = 1 : i64, tpu.core_type = #tpu.core_type<tc>, window_params = [{transform_indices = @transform_0, window_bounds = array<i64: 16, 32>}, {transform_indices = @transform_1, window_bounds = array<i64: 32, 96>}, {transform_indices = @transform_2, window_bounds = array<i64: 1, 96>}, {pipeline_mode = #tpu.pipeline_mode<synchronous>, transform_indices = @transform_3, window_bounds = array<i64: 1, 32>}, {pipeline_mode = #tpu.pipeline_mode<synchronous>, transform_indices = @transform_4, window_bounds = array<i64: 1, 32>}, {transform_indices = @transform_5, window_bounds = array<i64: 16, 96>}]} {
    %c0_i32 = arith.constant 0 : i32
    %0 = arith.cmpi eq, %arg1, %c0_i32 : i32
    %1 = arith.extui %0 : i1 to i32
    %c0_i32_0 = arith.constant 0 : i32
    %2 = arith.cmpi ne, %1, %c0_i32_0 : i32
    scf.if %2 {
      %c0_8 = arith.constant 0 : index
      %c0_9 = arith.constant 0 : index
      %11 = vector.load %arg2[%c0_8, %c0_9] : memref<16x32xbf16, #tpu.memory_space<vmem>>, vector<16x32xbf16>
      %12 = arith.extf %11 : vector<16x32xbf16> to vector<16x32xf32>
      %cst_10 = arith.constant dense<0.000000e+00> : vector<16xf32>
      %13 = vector.multi_reduction <add>, %12, %cst_10 [1] : vector<16x32xf32> to vector<16xf32>
      %14 = vector.shape_cast %13 : vector<16xf32> to vector<16x1xf32>
      %cst_11 = arith.constant 3.200000e+01 : f32
      %15 = vector.broadcast %cst_11 : f32 to vector<16x1xf32>
      %16 = arith.divf %14, %15 : vector<16x1xf32>
      %17 = vector.broadcast %16 : vector<16x1xf32> to vector<16x32xf32>
      %18 = arith.subf %12, %17 : vector<16x32xf32>
      %19 = arith.mulf %18, %18 : vector<16x32xf32>
      %cst_12 = arith.constant dense<0.000000e+00> : vector<16xf32>
      %20 = vector.multi_reduction <add>, %19, %cst_12 [1] : vector<16x32xf32> to vector<16xf32>
      %21 = vector.shape_cast %20 : vector<16xf32> to vector<16x1xf32>
      %cst_13 = arith.constant 3.200000e+01 : f32
      %22 = vector.broadcast %cst_13 : f32 to vector<16x1xf32>
      %23 = arith.divf %21, %22 : vector<16x1xf32>
      %24 = vector.broadcast %16 : vector<16x1xf32> to vector<16x32xf32>
      %25 = arith.subf %12, %24 : vector<16x32xf32>
      %cst_14 = arith.constant 9.99999974E-6 : f32
      %26 = vector.broadcast %cst_14 : f32 to vector<16x1xf32>
      %27 = arith.addf %23, %26 : vector<16x1xf32>
      %28 = math.rsqrt %27 : vector<16x1xf32>
      %29 = vector.broadcast %28 : vector<16x1xf32> to vector<16x32xf32>
      %30 = arith.mulf %25, %29 : vector<16x32xf32>
      %c0_15 = arith.constant 0 : index
      %c0_16 = arith.constant 0 : index
      %31 = vector.load %arg5[%c0_15, %c0_16] : memref<1x32xf32, #tpu.memory_space<vmem>>, vector<1x32xf32>
      %32 = vector.broadcast %31 : vector<1x32xf32> to vector<16x32xf32>
      %33 = arith.mulf %30, %32 : vector<16x32xf32>
      %c0_17 = arith.constant 0 : index
      %c0_18 = arith.constant 0 : index
      %34 = vector.load %arg6[%c0_17, %c0_18] : memref<1x32xf32, #tpu.memory_space<vmem>>, vector<1x32xf32>
      %35 = vector.broadcast %34 : vector<1x32xf32> to vector<16x32xf32>
      %36 = arith.addf %33, %35 : vector<16x32xf32>
      %37 = arith.truncf %36 : vector<16x32xf32> to vector<16x32xbf16>
      %c0_19 = arith.constant 0 : index
      %c0_20 = arith.constant 0 : index
      %38 = vector.load %arg8[%c0_19, %c0_20] : memref<16x32xbf16, #tpu.memory_space<vmem>>, vector<16x32xbf16>
      tpu.vector_store %arg8[%c0_19, %c0_20], %37 {strides = array<i32>} : memref<16x32xbf16, #tpu.memory_space<vmem>>, vector<16x32xbf16>,
    } else {
    }
    %c0 = arith.constant 0 : index
    %c0_1 = arith.constant 0 : index
    %3 = vector.load %arg8[%c0, %c0_1] : memref<16x32xbf16, #tpu.memory_space<vmem>>, vector<16x32xbf16>
    %c0_2 = arith.constant 0 : index
    %c0_3 = arith.constant 0 : index
    %4 = vector.load %arg3[%c0_2, %c0_3] : memref<32x96xbf16, #tpu.memory_space<vmem>>, vector<32x96xbf16>
    %cst = arith.constant dense<0.000000e+00> : vector<16x96xf32>
    %5 = tpu.matmul %3, %4, %cst {dimension_numbers = #tpu.dot_dimension_numbers<[1], [0], [0], [1], [0, 0, 1, 1], [], []>} : vector<16x32xbf16>, vector<32x96xbf16>, vector<16x96xf32> -> vector<16x96xf32>
    %c0_4 = arith.constant 0 : index
    %c0_5 = arith.constant 0 : index
    %6 = vector.load %arg4[%c0_4, %c0_5] : memref<1x96xf32, #tpu.memory_space<vmem>>, vector<1x96xf32>
    %7 = vector.broadcast %6 : vector<1x96xf32> to vector<16x96xf32>
    %8 = arith.addf %5, %7 : vector<16x96xf32>
    %9 = arith.truncf %8 : vector<16x96xf32> to vector<16x96xbf16>
    %c0_6 = arith.constant 0 : index
    %c0_7 = arith.constant 0 : index
    %10 = vector.load %arg7[%c0_6, %c0_7] : memref<16x96xbf16, #tpu.memory_space<vmem>>, vector<16x96xbf16>
    tpu.vector_store %arg7[%c0_6, %c0_7], %9 {strides = array<i32>} : memref<16x96xbf16, #tpu.memory_space<vmem>>, vector<16x96xbf16>,
    return
  }
  func.func @transform_0(%arg0: i32, %arg1: i32) -> (i32, i32) {
    %c0_i32 = arith.constant 0 : i32
    %c0_i32_0 = arith.constant 0 : i32
    return %arg0, %c0_i32 : i32, i32
  }
  func.func @transform_1(%arg0: i32, %arg1: i32) -> (i32, i32) {
    %c0_i32 = arith.constant 0 : i32
    %c0_i32_0 = arith.constant 0 : i32
    return %c0_i32, %arg1 : i32, i32
  }
  func.func @transform_2(%arg0: i32, %arg1: i32) -> (i32, i32) {
    %c0_i32 = arith.constant 0 : i32
    %c0_i32_0 = arith.constant 0 : i32
    return %c0_i32, %arg1 : i32, i32
  }
  func.func @transform_3(%arg0: i32, %arg1: i32) -> (i32, i32) {
    %c0_i32 = arith.constant 0 : i32
    %c0_i32_0 = arith.constant 0 : i32
    %c0_i32_1 = arith.constant 0 : i32
    return %c0_i32, %c0_i32_0 : i32, i32
  }
  func.func @transform_4(%arg0: i32, %arg1: i32) -> (i32, i32) {
    %c0_i32 = arith.constant 0 : i32
    %c0_i32_0 = arith.constant 0 : i32
    %c0_i32_1 = arith.constant 0 : i32
    return %c0_i32, %c0_i32_0 : i32, i32
  }
  func.func @transform_5(%arg0: i32, %arg1: i32) -> (i32, i32) {
    %c0_i32 = arith.constant 0 : i32
    return %arg0, %arg1 : i32, i32
  }
}

module attributes {stable_mosaic.version = 11 : i64} {
  func.func @_embed_kernel(%arg0: i32, %arg1: i32, %arg2: memref<16xi32, #tpu.memory_space<smem>>, %arg3: memref<64x32xf32, #tpu.memory_space<any>>, %arg4: memref<1x8x32xf32, #tpu.memory_space<vmem>>, %arg5: memref<1x8x32xbf16, #tpu.memory_space<vmem>>, %arg6: memref<8x32xf32, #tpu.memory_space<vmem>>, %arg7: memref<8x!tpu.dma_semaphore, #tpu.memory_space<semaphore_mem>>) attributes {dimension_semantics = [#tpu.dimension_semantics<arbitrary>, #tpu.dimension_semantics<arbitrary>], iteration_bounds = array<i64: 2, 1>, scalar_prefetch = 1 : i64, scratch_operands = 2 : i64, tpu.core_type = #tpu.core_type<tc>, window_params = [{}, {transform_indices = @transform_1, window_bounds = array<i64: 1, 8, 32>}, {transform_indices = @transform_2, window_bounds = array<i64: 1, 8, 32>}]} {
    %c8_i32 = arith.constant 8 : i32
    %0 = arith.muli %arg0, %c8_i32 : i32
    %c8_i32_0 = arith.constant 8 : i32
    %1 = arith.muli %arg1, %c8_i32_0 : i32
    %2 = arith.addi %0, %1 : i32
    %c0_i32 = arith.constant 0 : i32
    %3 = arith.addi %2, %c0_i32 : i32
    %4 = arith.index_cast %3 : i32 to index
    %5 = memref.load %arg2[%4] : memref<16xi32, #tpu.memory_space<smem>>
    %c0_i32_1 = arith.constant 0 : i32
    %c0_i32_2 = arith.constant 0 : i32
    %6 = tpu.memref_slice %arg3[%5, %c0_i32_2] : memref<64x32xf32, #tpu.memory_space<any>> -> memref<1x32xf32, #tpu.memory_space<any>>
    %c0_i32_3 = arith.constant 0 : i32
    %c0_i32_4 = arith.constant 0 : i32
    %7 = tpu.memref_slice %arg6[%c0_i32_3, %c0_i32_4] : memref<8x32xf32, #tpu.memory_space<vmem>> -> memref<1x32xf32, #tpu.memory_space<vmem>>
    %8 = tpu.memref_slice %arg7[%c0_i32_1] : memref<8x!tpu.dma_semaphore, #tpu.memory_space<semaphore_mem>> -> memref<1x!tpu.dma_semaphore, #tpu.memory_space<semaphore_mem>>
    %9 = tpu.memref_squeeze %8 : memref<1x!tpu.dma_semaphore, #tpu.memory_space<semaphore_mem>> -> memref<!tpu.dma_semaphore, #tpu.memory_space<semaphore_mem>>
    tpu.enqueue_dma source(%6 : memref<1x32xf32, #tpu.memory_space<any>>) target(%7 : memref<1x32xf32, #tpu.memory_space<vmem>>) target_semaphore(%9 : memref<!tpu.dma_semaphore, #tpu.memory_space<semaphore_mem>>)
    %c1_i32 = arith.constant 1 : i32
    %10 = arith.addi %2, %c1_i32 : i32
    %11 = arith.index_cast %10 : i32 to index
    %12 = memref.load %arg2[%11] : memref<16xi32, #tpu.memory_space<smem>>
    %c1_i32_5 = arith.constant 1 : i32
    %c0_i32_6 = arith.constant 0 : i32
    %13 = tpu.memref_slice %arg3[%12, %c0_i32_6] : memref<64x32xf32, #tpu.memory_space<any>> -> memref<1x32xf32, #tpu.memory_space<any>>
    %c1_i32_7 = arith.constant 1 : i32
    %c0_i32_8 = arith.constant 0 : i32
    %14 = tpu.memref_slice %arg6[%c1_i32_7, %c0_i32_8] : memref<8x32xf32, #tpu.memory_space<vmem>> -> memref<1x32xf32, #tpu.memory_space<vmem>>
    %15 = tpu.memref_slice %arg7[%c1_i32_5] : memref<8x!tpu.dma_semaphore, #tpu.memory_space<semaphore_mem>> -> memref<1x!tpu.dma_semaphore, #tpu.memory_space<semaphore_mem>>
    %16 = tpu.memref_squeeze %15 : memref<1x!tpu.dma_semaphore, #tpu.memory_space<semaphore_mem>> -> memref<!tpu.dma_semaphore, #tpu.memory_space<semaphore_mem>>
    tpu.enqueue_dma source(%13 : memref<1x32xf32, #tpu.memory_space<any>>) target(%14 : memref<1x32xf32, #tpu.memory_space<vmem>>) target_semaphore(%16 : memref<!tpu.dma_semaphore, #tpu.memory_space<semaphore_mem>>)
    %c2_i32 = arith.constant 2 : i32
    %17 = arith.addi %2, %c2_i32 : i32
    %18 = arith.index_cast %17 : i32 to index
    %19 = memref.load %arg2[%18] : memref<16xi32, #tpu.memory_space<smem>>
    %c2_i32_9 = arith.constant 2 : i32
    %c0_i32_10 = arith.constant 0 : i32
    %20 = tpu.memref_slice %arg3[%19, %c0_i32_10] : memref<64x32xf32, #tpu.memory_space<any>> -> memref<1x32xf32, #tpu.memory_space<any>>
    %c2_i32_11 = arith.constant 2 : i32
    %c0_i32_12 = arith.constant 0 : i32
    %21 = tpu.memref_slice %arg6[%c2_i32_11, %c0_i32_12] : memref<8x32xf32, #tpu.memory_space<vmem>> -> memref<1x32xf32, #tpu.memory_space<vmem>>
    %22 = tpu.memref_slice %arg7[%c2_i32_9] : memref<8x!tpu.dma_semaphore, #tpu.memory_space<semaphore_mem>> -> memref<1x!tpu.dma_semaphore, #tpu.memory_space<semaphore_mem>>
    %23 = tpu.memref_squeeze %22 : memref<1x!tpu.dma_semaphore, #tpu.memory_space<semaphore_mem>> -> memref<!tpu.dma_semaphore, #tpu.memory_space<semaphore_mem>>
    tpu.enqueue_dma source(%20 : memref<1x32xf32, #tpu.memory_space<any>>) target(%21 : memref<1x32xf32, #tpu.memory_space<vmem>>) target_semaphore(%23 : memref<!tpu.dma_semaphore, #tpu.memory_space<semaphore_mem>>)
    %c3_i32 = arith.constant 3 : i32
    %24 = arith.addi %2, %c3_i32 : i32
    %25 = arith.index_cast %24 : i32 to index
    %26 = memref.load %arg2[%25] : memref<16xi32, #tpu.memory_space<smem>>
    %c3_i32_13 = arith.constant 3 : i32
    %c0_i32_14 = arith.constant 0 : i32
    %27 = tpu.memref_slice %arg3[%26, %c0_i32_14] : memref<64x32xf32, #tpu.memory_space<any>> -> memref<1x32xf32, #tpu.memory_space<any>>
    %c3_i32_15 = arith.constant 3 : i32
    %c0_i32_16 = arith.constant 0 : i32
    %28 = tpu.memref_slice %arg6[%c3_i32_15, %c0_i32_16] : memref<8x32xf32, #tpu.memory_space<vmem>> -> memref<1x32xf32, #tpu.memory_space<vmem>>
    %29 = tpu.memref_slice %arg7[%c3_i32_13] : memref<8x!tpu.dma_semaphore, #tpu.memory_space<semaphore_mem>> -> memref<1x!tpu.dma_semaphore, #tpu.memory_space<semaphore_mem>>
    %30 = tpu.memref_squeeze %29 : memref<1x!tpu.dma_semaphore, #tpu.memory_space<semaphore_mem>> -> memref<!tpu.dma_semaphore, #tpu.memory_space<semaphore_mem>>
    tpu.enqueue_dma source(%27 : memref<1x32xf32, #tpu.memory_space<any>>) target(%28 : memref<1x32xf32, #tpu.memory_space<vmem>>) target_semaphore(%30 : memref<!tpu.dma_semaphore, #tpu.memory_space<semaphore_mem>>)
    %c4_i32 = arith.constant 4 : i32
    %31 = arith.addi %2, %c4_i32 : i32
    %32 = arith.index_cast %31 : i32 to index
    %33 = memref.load %arg2[%32] : memref<16xi32, #tpu.memory_space<smem>>
    %c4_i32_17 = arith.constant 4 : i32
    %c0_i32_18 = arith.constant 0 : i32
    %34 = tpu.memref_slice %arg3[%33, %c0_i32_18] : memref<64x32xf32, #tpu.memory_space<any>> -> memref<1x32xf32, #tpu.memory_space<any>>
    %c4_i32_19 = arith.constant 4 : i32
    %c0_i32_20 = arith.constant 0 : i32
    %35 = tpu.memref_slice %arg6[%c4_i32_19, %c0_i32_20] : memref<8x32xf32, #tpu.memory_space<vmem>> -> memref<1x32xf32, #tpu.memory_space<vmem>>
    %36 = tpu.memref_slice %arg7[%c4_i32_17] : memref<8x!tpu.dma_semaphore, #tpu.memory_space<semaphore_mem>> -> memref<1x!tpu.dma_semaphore, #tpu.memory_space<semaphore_mem>>
    %37 = tpu.memref_squeeze %36 : memref<1x!tpu.dma_semaphore, #tpu.memory_space<semaphore_mem>> -> memref<!tpu.dma_semaphore, #tpu.memory_space<semaphore_mem>>
    tpu.enqueue_dma source(%34 : memref<1x32xf32, #tpu.memory_space<any>>) target(%35 : memref<1x32xf32, #tpu.memory_space<vmem>>) target_semaphore(%37 : memref<!tpu.dma_semaphore, #tpu.memory_space<semaphore_mem>>)
    %c5_i32 = arith.constant 5 : i32
    %38 = arith.addi %2, %c5_i32 : i32
    %39 = arith.index_cast %38 : i32 to index
    %40 = memref.load %arg2[%39] : memref<16xi32, #tpu.memory_space<smem>>
    %c5_i32_21 = arith.constant 5 : i32
    %c0_i32_22 = arith.constant 0 : i32
    %41 = tpu.memref_slice %arg3[%40, %c0_i32_22] : memref<64x32xf32, #tpu.memory_space<any>> -> memref<1x32xf32, #tpu.memory_space<any>>
    %c5_i32_23 = arith.constant 5 : i32
    %c0_i32_24 = arith.constant 0 : i32
    %42 = tpu.memref_slice %arg6[%c5_i32_23, %c0_i32_24] : memref<8x32xf32, #tpu.memory_space<vmem>> -> memref<1x32xf32, #tpu.memory_space<vmem>>
    %43 = tpu.memref_slice %arg7[%c5_i32_21] : memref<8x!tpu.dma_semaphore, #tpu.memory_space<semaphore_mem>> -> memref<1x!tpu.dma_semaphore, #tpu.memory_space<semaphore_mem>>
    %44 = tpu.memref_squeeze %43 : memref<1x!tpu.dma_semaphore, #tpu.memory_space<semaphore_mem>> -> memref<!tpu.dma_semaphore, #tpu.memory_space<semaphore_mem>>
    tpu.enqueue_dma source(%41 : memref<1x32xf32, #tpu.memory_space<any>>) target(%42 : memref<1x32xf32, #tpu.memory_space<vmem>>) target_semaphore(%44 : memref<!tpu.dma_semaphore, #tpu.memory_space<semaphore_mem>>)
    %c6_i32 = arith.constant 6 : i32
    %45 = arith.addi %2, %c6_i32 : i32
    %46 = arith.index_cast %45 : i32 to index
    %47 = memref.load %arg2[%46] : memref<16xi32, #tpu.memory_space<smem>>
    %c6_i32_25 = arith.constant 6 : i32
    %c0_i32_26 = arith.constant 0 : i32
    %48 = tpu.memref_slice %arg3[%47, %c0_i32_26] : memref<64x32xf32, #tpu.memory_space<any>> -> memref<1x32xf32, #tpu.memory_space<any>>
    %c6_i32_27 = arith.constant 6 : i32
    %c0_i32_28 = arith.constant 0 : i32
    %49 = tpu.memref_slice %arg6[%c6_i32_27, %c0_i32_28] : memref<8x32xf32, #tpu.memory_space<vmem>> -> memref<1x32xf32, #tpu.memory_space<vmem>>
    %50 = tpu.memref_slice %arg7[%c6_i32_25] : memref<8x!tpu.dma_semaphore, #tpu.memory_space<semaphore_mem>> -> memref<1x!tpu.dma_semaphore, #tpu.memory_space<semaphore_mem>>
    %51 = tpu.memref_squeeze %50 : memref<1x!tpu.dma_semaphore, #tpu.memory_space<semaphore_mem>> -> memref<!tpu.dma_semaphore, #tpu.memory_space<semaphore_mem>>
    tpu.enqueue_dma source(%48 : memref<1x32xf32, #tpu.memory_space<any>>) target(%49 : memref<1x32xf32, #tpu.memory_space<vmem>>) target_semaphore(%51 : memref<!tpu.dma_semaphore, #tpu.memory_space<semaphore_mem>>)
    %c7_i32 = arith.constant 7 : i32
    %52 = arith.addi %2, %c7_i32 : i32
    %53 = arith.index_cast %52 : i32 to index
    %54 = memref.load %arg2[%53] : memref<16xi32, #tpu.memory_space<smem>>
    %c7_i32_29 = arith.constant 7 : i32
    %c0_i32_30 = arith.constant 0 : i32
    %55 = tpu.memref_slice %arg3[%54, %c0_i32_30] : memref<64x32xf32, #tpu.memory_space<any>> -> memref<1x32xf32, #tpu.memory_space<any>>
    %c7_i32_31 = arith.constant 7 : i32
    %c0_i32_32 = arith.constant 0 : i32
    %56 = tpu.memref_slice %arg6[%c7_i32_31, %c0_i32_32] : memref<8x32xf32, #tpu.memory_space<vmem>> -> memref<1x32xf32, #tpu.memory_space<vmem>>
    %57 = tpu.memref_slice %arg7[%c7_i32_29] : memref<8x!tpu.dma_semaphore, #tpu.memory_space<semaphore_mem>> -> memref<1x!tpu.dma_semaphore, #tpu.memory_space<semaphore_mem>>
    %58 = tpu.memref_squeeze %57 : memref<1x!tpu.dma_semaphore, #tpu.memory_space<semaphore_mem>> -> memref<!tpu.dma_semaphore, #tpu.memory_space<semaphore_mem>>
    tpu.enqueue_dma source(%55 : memref<1x32xf32, #tpu.memory_space<any>>) target(%56 : memref<1x32xf32, #tpu.memory_space<vmem>>) target_semaphore(%58 : memref<!tpu.dma_semaphore, #tpu.memory_space<semaphore_mem>>)
    %c0_i32_33 = arith.constant 0 : i32
    %c0_i32_34 = arith.constant 0 : i32
    %c0_i32_35 = arith.constant 0 : i32
    %59 = tpu.memref_slice %arg3[%c0_i32_34, %c0_i32_35] : memref<64x32xf32, #tpu.memory_space<any>> -> memref<1x32xf32, #tpu.memory_space<any>>
    %c0_i32_36 = arith.constant 0 : i32
    %c0_i32_37 = arith.constant 0 : i32
    %60 = tpu.memref_slice %arg6[%c0_i32_36, %c0_i32_37] : memref<8x32xf32, #tpu.memory_space<vmem>> -> memref<1x32xf32, #tpu.memory_space<vmem>>
    %61 = tpu.memref_slice %arg7[%c0_i32_33] : memref<8x!tpu.dma_semaphore, #tpu.memory_space<semaphore_mem>> -> memref<1x!tpu.dma_semaphore, #tpu.memory_space<semaphore_mem>>
    %62 = tpu.memref_squeeze %61 : memref<1x!tpu.dma_semaphore, #tpu.memory_space<semaphore_mem>> -> memref<!tpu.dma_semaphore, #tpu.memory_space<semaphore_mem>>
    tpu.wait_dma2 semaphore(%62 : memref<!tpu.dma_semaphore, #tpu.memory_space<semaphore_mem>>) src(%59 : memref<1x32xf32, #tpu.memory_space<any>>) dst(%60 : memref<1x32xf32, #tpu.memory_space<vmem>>)
    %c1_i32_38 = arith.constant 1 : i32
    %c0_i32_39 = arith.constant 0 : i32
    %c0_i32_40 = arith.constant 0 : i32
    %63 = tpu.memref_slice %arg3[%c0_i32_39, %c0_i32_40] : memref<64x32xf32, #tpu.memory_space<any>> -> memref<1x32xf32, #tpu.memory_space<any>>
    %c1_i32_41 = arith.constant 1 : i32
    %c0_i32_42 = arith.constant 0 : i32
    %64 = tpu.memref_slice %arg6[%c1_i32_41, %c0_i32_42] : memref<8x32xf32, #tpu.memory_space<vmem>> -> memref<1x32xf32, #tpu.memory_space<vmem>>
    %65 = tpu.memref_slice %arg7[%c1_i32_38] : memref<8x!tpu.dma_semaphore, #tpu.memory_space<semaphore_mem>> -> memref<1x!tpu.dma_semaphore, #tpu.memory_space<semaphore_mem>>
    %66 = tpu.memref_squeeze %65 : memref<1x!tpu.dma_semaphore, #tpu.memory_space<semaphore_mem>> -> memref<!tpu.dma_semaphore, #tpu.memory_space<semaphore_mem>>
    tpu.wait_dma2 semaphore(%66 : memref<!tpu.dma_semaphore, #tpu.memory_space<semaphore_mem>>) src(%63 : memref<1x32xf32, #tpu.memory_space<any>>) dst(%64 : memref<1x32xf32, #tpu.memory_space<vmem>>)
    %c2_i32_43 = arith.constant 2 : i32
    %c0_i32_44 = arith.constant 0 : i32
    %c0_i32_45 = arith.constant 0 : i32
    %67 = tpu.memref_slice %arg3[%c0_i32_44, %c0_i32_45] : memref<64x32xf32, #tpu.memory_space<any>> -> memref<1x32xf32, #tpu.memory_space<any>>
    %c2_i32_46 = arith.constant 2 : i32
    %c0_i32_47 = arith.constant 0 : i32
    %68 = tpu.memref_slice %arg6[%c2_i32_46, %c0_i32_47] : memref<8x32xf32, #tpu.memory_space<vmem>> -> memref<1x32xf32, #tpu.memory_space<vmem>>
    %69 = tpu.memref_slice %arg7[%c2_i32_43] : memref<8x!tpu.dma_semaphore, #tpu.memory_space<semaphore_mem>> -> memref<1x!tpu.dma_semaphore, #tpu.memory_space<semaphore_mem>>
    %70 = tpu.memref_squeeze %69 : memref<1x!tpu.dma_semaphore, #tpu.memory_space<semaphore_mem>> -> memref<!tpu.dma_semaphore, #tpu.memory_space<semaphore_mem>>
    tpu.wait_dma2 semaphore(%70 : memref<!tpu.dma_semaphore, #tpu.memory_space<semaphore_mem>>) src(%67 : memref<1x32xf32, #tpu.memory_space<any>>) dst(%68 : memref<1x32xf32, #tpu.memory_space<vmem>>)
    %c3_i32_48 = arith.constant 3 : i32
    %c0_i32_49 = arith.constant 0 : i32
    %c0_i32_50 = arith.constant 0 : i32
    %71 = tpu.memref_slice %arg3[%c0_i32_49, %c0_i32_50] : memref<64x32xf32, #tpu.memory_space<any>> -> memref<1x32xf32, #tpu.memory_space<any>>
    %c3_i32_51 = arith.constant 3 : i32
    %c0_i32_52 = arith.constant 0 : i32
    %72 = tpu.memref_slice %arg6[%c3_i32_51, %c0_i32_52] : memref<8x32xf32, #tpu.memory_space<vmem>> -> memref<1x32xf32, #tpu.memory_space<vmem>>
    %73 = tpu.memref_slice %arg7[%c3_i32_48] : memref<8x!tpu.dma_semaphore, #tpu.memory_space<semaphore_mem>> -> memref<1x!tpu.dma_semaphore, #tpu.memory_space<semaphore_mem>>
    %74 = tpu.memref_squeeze %73 : memref<1x!tpu.dma_semaphore, #tpu.memory_space<semaphore_mem>> -> memref<!tpu.dma_semaphore, #tpu.memory_space<semaphore_mem>>
    tpu.wait_dma2 semaphore(%74 : memref<!tpu.dma_semaphore, #tpu.memory_space<semaphore_mem>>) src(%71 : memref<1x32xf32, #tpu.memory_space<any>>) dst(%72 : memref<1x32xf32, #tpu.memory_space<vmem>>)
    %c4_i32_53 = arith.constant 4 : i32
    %c0_i32_54 = arith.constant 0 : i32
    %c0_i32_55 = arith.constant 0 : i32
    %75 = tpu.memref_slice %arg3[%c0_i32_54, %c0_i32_55] : memref<64x32xf32, #tpu.memory_space<any>> -> memref<1x32xf32, #tpu.memory_space<any>>
    %c4_i32_56 = arith.constant 4 : i32
    %c0_i32_57 = arith.constant 0 : i32
    %76 = tpu.memref_slice %arg6[%c4_i32_56, %c0_i32_57] : memref<8x32xf32, #tpu.memory_space<vmem>> -> memref<1x32xf32, #tpu.memory_space<vmem>>
    %77 = tpu.memref_slice %arg7[%c4_i32_53] : memref<8x!tpu.dma_semaphore, #tpu.memory_space<semaphore_mem>> -> memref<1x!tpu.dma_semaphore, #tpu.memory_space<semaphore_mem>>
    %78 = tpu.memref_squeeze %77 : memref<1x!tpu.dma_semaphore, #tpu.memory_space<semaphore_mem>> -> memref<!tpu.dma_semaphore, #tpu.memory_space<semaphore_mem>>
    tpu.wait_dma2 semaphore(%78 : memref<!tpu.dma_semaphore, #tpu.memory_space<semaphore_mem>>) src(%75 : memref<1x32xf32, #tpu.memory_space<any>>) dst(%76 : memref<1x32xf32, #tpu.memory_space<vmem>>)
    %c5_i32_58 = arith.constant 5 : i32
    %c0_i32_59 = arith.constant 0 : i32
    %c0_i32_60 = arith.constant 0 : i32
    %79 = tpu.memref_slice %arg3[%c0_i32_59, %c0_i32_60] : memref<64x32xf32, #tpu.memory_space<any>> -> memref<1x32xf32, #tpu.memory_space<any>>
    %c5_i32_61 = arith.constant 5 : i32
    %c0_i32_62 = arith.constant 0 : i32
    %80 = tpu.memref_slice %arg6[%c5_i32_61, %c0_i32_62] : memref<8x32xf32, #tpu.memory_space<vmem>> -> memref<1x32xf32, #tpu.memory_space<vmem>>
    %81 = tpu.memref_slice %arg7[%c5_i32_58] : memref<8x!tpu.dma_semaphore, #tpu.memory_space<semaphore_mem>> -> memref<1x!tpu.dma_semaphore, #tpu.memory_space<semaphore_mem>>
    %82 = tpu.memref_squeeze %81 : memref<1x!tpu.dma_semaphore, #tpu.memory_space<semaphore_mem>> -> memref<!tpu.dma_semaphore, #tpu.memory_space<semaphore_mem>>
    tpu.wait_dma2 semaphore(%82 : memref<!tpu.dma_semaphore, #tpu.memory_space<semaphore_mem>>) src(%79 : memref<1x32xf32, #tpu.memory_space<any>>) dst(%80 : memref<1x32xf32, #tpu.memory_space<vmem>>)
    %c6_i32_63 = arith.constant 6 : i32
    %c0_i32_64 = arith.constant 0 : i32
    %c0_i32_65 = arith.constant 0 : i32
    %83 = tpu.memref_slice %arg3[%c0_i32_64, %c0_i32_65] : memref<64x32xf32, #tpu.memory_space<any>> -> memref<1x32xf32, #tpu.memory_space<any>>
    %c6_i32_66 = arith.constant 6 : i32
    %c0_i32_67 = arith.constant 0 : i32
    %84 = tpu.memref_slice %arg6[%c6_i32_66, %c0_i32_67] : memref<8x32xf32, #tpu.memory_space<vmem>> -> memref<1x32xf32, #tpu.memory_space<vmem>>
    %85 = tpu.memref_slice %arg7[%c6_i32_63] : memref<8x!tpu.dma_semaphore, #tpu.memory_space<semaphore_mem>> -> memref<1x!tpu.dma_semaphore, #tpu.memory_space<semaphore_mem>>
    %86 = tpu.memref_squeeze %85 : memref<1x!tpu.dma_semaphore, #tpu.memory_space<semaphore_mem>> -> memref<!tpu.dma_semaphore, #tpu.memory_space<semaphore_mem>>
    tpu.wait_dma2 semaphore(%86 : memref<!tpu.dma_semaphore, #tpu.memory_space<semaphore_mem>>) src(%83 : memref<1x32xf32, #tpu.memory_space<any>>) dst(%84 : memref<1x32xf32, #tpu.memory_space<vmem>>)
    %c7_i32_68 = arith.constant 7 : i32
    %c0_i32_69 = arith.constant 0 : i32
    %c0_i32_70 = arith.constant 0 : i32
    %87 = tpu.memref_slice %arg3[%c0_i32_69, %c0_i32_70] : memref<64x32xf32, #tpu.memory_space<any>> -> memref<1x32xf32, #tpu.memory_space<any>>
    %c7_i32_71 = arith.constant 7 : i32
    %c0_i32_72 = arith.constant 0 : i32
    %88 = tpu.memref_slice %arg6[%c7_i32_71, %c0_i32_72] : memref<8x32xf32, #tpu.memory_space<vmem>> -> memref<1x32xf32, #tpu.memory_space<vmem>>
    %89 = tpu.memref_slice %arg7[%c7_i32_68] : memref<8x!tpu.dma_semaphore, #tpu.memory_space<semaphore_mem>> -> memref<1x!tpu.dma_semaphore, #tpu.memory_space<semaphore_mem>>
    %90 = tpu.memref_squeeze %89 : memref<1x!tpu.dma_semaphore, #tpu.memory_space<semaphore_mem>> -> memref<!tpu.dma_semaphore, #tpu.memory_space<semaphore_mem>>
    tpu.wait_dma2 semaphore(%90 : memref<!tpu.dma_semaphore, #tpu.memory_space<semaphore_mem>>) src(%87 : memref<1x32xf32, #tpu.memory_space<any>>) dst(%88 : memref<1x32xf32, #tpu.memory_space<vmem>>)
    %c0 = arith.constant 0 : index
    %c0_73 = arith.constant 0 : index
    %91 = vector.load %arg6[%c0, %c0_73] : memref<8x32xf32, #tpu.memory_space<vmem>>, vector<8x32xf32>
    %c0_74 = arith.constant 0 : index
    %c0_75 = arith.constant 0 : index
    %c0_76 = arith.constant 0 : index
    %92 = vector.load %arg4[%c0_74, %c0_75, %c0_76] : memref<1x8x32xf32, #tpu.memory_space<vmem>>, vector<1x8x32xf32>
    %93 = vector.shape_cast %92 : vector<1x8x32xf32> to vector<8x32xf32>
    %94 = arith.addf %91, %93 : vector<8x32xf32>
    %95 = arith.truncf %94 : vector<8x32xf32> to vector<8x32xbf16>
    %c0_77 = arith.constant 0 : index
    %c0_78 = arith.constant 0 : index
    %c0_79 = arith.constant 0 : index
    %96 = vector.load %arg5[%c0_77, %c0_78, %c0_79] : memref<1x8x32xbf16, #tpu.memory_space<vmem>>, vector<1x8x32xbf16>
    %97 = vector.shape_cast %96 : vector<1x8x32xbf16> to vector<8x32xbf16>
    %98 = vector.shape_cast %95 : vector<8x32xbf16> to vector<1x8x32xbf16>
    tpu.vector_store %arg5[%c0_77, %c0_78, %c0_79], %98 {strides = array<i32>} : memref<1x8x32xbf16, #tpu.memory_space<vmem>>, vector<1x8x32xbf16>,
    return
  }
  func.func @transform_1(%arg0: i32, %arg1: i32, %arg2: memref<16xi32, #tpu.memory_space<smem>>) -> (i32, i32, i32) {
    %c0_i32 = arith.constant 0 : i32
    %c0_i32_0 = arith.constant 0 : i32
    %c0_i32_1 = arith.constant 0 : i32
    return %c0_i32, %arg1, %c0_i32_0 : i32, i32, i32
  }
  func.func @transform_2(%arg0: i32, %arg1: i32, %arg2: memref<16xi32, #tpu.memory_space<smem>>) -> (i32, i32, i32) {
    %c0_i32 = arith.constant 0 : i32
    %c0_i32_0 = arith.constant 0 : i32
    return %arg0, %arg1, %c0_i32 : i32, i32, i32
  }
}

module attributes {stable_mosaic.version = 11 : i64} {
  func.func @_flash_attn_kernel(%arg0: i32, %arg1: i32, %arg2: i32, %arg3: memref<1x1x8x8xbf16, #tpu.memory_space<vmem>>, %arg4: memref<1x1x8x8xbf16, #tpu.memory_space<vmem>>, %arg5: memref<1x1x8x8xbf16, #tpu.memory_space<vmem>>, %arg6: memref<1x8x8xbf16, #tpu.memory_space<vmem>>, %arg7: memref<8x1xf32, #tpu.memory_space<vmem>>, %arg8: memref<8x1xf32, #tpu.memory_space<vmem>>, %arg9: memref<8x8xf32, #tpu.memory_space<vmem>>) attributes {dimension_semantics = [#tpu.dimension_semantics<parallel>, #tpu.dimension_semantics<parallel>, #tpu.dimension_semantics<arbitrary>], iteration_bounds = array<i64: 8, 1, 1>, scalar_prefetch = 0 : i64, scratch_operands = 3 : i64, tpu.core_type = #tpu.core_type<tc>, window_params = [{transform_indices = @transform_0, window_bounds = array<i64: 1, 1, 8, 8>}, {transform_indices = @transform_1, window_bounds = array<i64: 1, 1, 8, 8>}, {transform_indices = @transform_2, window_bounds = array<i64: 1, 1, 8, 8>}, {transform_indices = @transform_3, window_bounds = array<i64: 1, 8, 8>}]} {
    %c0_i32 = arith.constant 0 : i32
    %0 = arith.cmpi eq, %arg2, %c0_i32 : i32
    %1 = arith.extui %0 : i1 to i32
    %c0_i32_0 = arith.constant 0 : i32
    %2 = arith.cmpi ne, %1, %c0_i32_0 : i32
    scf.if %2 {
      %cst = arith.constant -1.000000e+30 : f32
      %13 = vector.broadcast %cst : f32 to vector<8x1xf32>
      %c0 = arith.constant 0 : index
      %c0_6 = arith.constant 0 : index
      %14 = vector.load %arg7[%c0, %c0_6] : memref<8x1xf32, #tpu.memory_space<vmem>>, vector<8x1xf32>
      tpu.vector_store %arg7[%c0, %c0_6], %13 {strides = array<i32>} : memref<8x1xf32, #tpu.memory_space<vmem>>, vector<8x1xf32>,
      %cst_7 = arith.constant 0.000000e+00 : f32
      %15 = vector.broadcast %cst_7 : f32 to vector<8x1xf32>
      %c0_8 = arith.constant 0 : index
      %c0_9 = arith.constant 0 : index
      %16 = vector.load %arg8[%c0_8, %c0_9] : memref<8x1xf32, #tpu.memory_space<vmem>>, vector<8x1xf32>
      tpu.vector_store %arg8[%c0_8, %c0_9], %15 {strides = array<i32>} : memref<8x1xf32, #tpu.memory_space<vmem>>, vector<8x1xf32>,
      %cst_10 = arith.constant 0.000000e+00 : f32
      %17 = vector.broadcast %cst_10 : f32 to vector<8x8xf32>
      %c0_11 = arith.constant 0 : index
      %c0_12 = arith.constant 0 : index
      %18 = vector.load %arg9[%c0_11, %c0_12] : memref<8x8xf32, #tpu.memory_space<vmem>>, vector<8x8xf32>
      tpu.vector_store %arg9[%c0_11, %c0_12], %17 {strides = array<i32>} : memref<8x8xf32, #tpu.memory_space<vmem>>, vector<8x8xf32>,
    } else {
    }
    %c8_i32 = arith.constant 8 : i32
    %3 = arith.muli %arg1, %c8_i32 : i32
    %c8_i32_1 = arith.constant 8 : i32
    %4 = arith.muli %arg2, %c8_i32_1 : i32
    %c8_i32_2 = arith.constant 8 : i32
    %5 = arith.addi %3, %c8_i32_2 : i32
    %c1_i32 = arith.constant 1 : i32
    %6 = arith.subi %5, %c1_i32 : i32
    %7 = arith.cmpi sle, %4, %6 : i32
    %8 = arith.extui %7 : i1 to i32
    %c0_i32_3 = arith.constant 0 : i32
    %9 = arith.cmpi ne, %8, %c0_i32_3 : i32
    scf.if %9 {
      %c0 = arith.constant 0 : index
      %c0_6 = arith.constant 0 : index
      %c0_7 = arith.constant 0 : index
      %c0_8 = arith.constant 0 : index
      %13 = vector.load %arg3[%c0, %c0_6, %c0_7, %c0_8] : memref<1x1x8x8xbf16, #tpu.memory_space<vmem>>, vector<1x1x8x8xbf16>
      %14 = vector.shape_cast %13 : vector<1x1x8x8xbf16> to vector<8x8xbf16>
      %cst = arith.constant 3.535160e-01 : bf16
      %15 = vector.broadcast %cst : bf16 to vector<8x8xbf16>
      %16 = arith.mulf %14, %15 : vector<8x8xbf16>
      %c0_9 = arith.constant 0 : index
      %c0_10 = arith.constant 0 : index
      %c0_11 = arith.constant 0 : index
      %c0_12 = arith.constant 0 : index
      %17 = vector.load %arg4[%c0_9, %c0_10, %c0_11, %c0_12] : memref<1x1x8x8xbf16, #tpu.memory_space<vmem>>, vector<1x1x8x8xbf16>
      %18 = vector.shape_cast %17 : vector<1x1x8x8xbf16> to vector<8x8xbf16>
      %c0_13 = arith.constant 0 : index
      %c0_14 = arith.constant 0 : index
      %c0_15 = arith.constant 0 : index
      %c0_16 = arith.constant 0 : index
      %19 = vector.load %arg5[%c0_13, %c0_14, %c0_15, %c0_16] : memref<1x1x8x8xbf16, #tpu.memory_space<vmem>>, vector<1x1x8x8xbf16>
      %20 = vector.shape_cast %19 : vector<1x1x8x8xbf16> to vector<8x8xbf16>
      %cst_17 = arith.constant dense<0.000000e+00> : vector<8x8xf32>
      %21 = tpu.matmul %16, %18, %cst_17 {dimension_numbers = #tpu.dot_dimension_numbers<[1], [1], [0], [0], [0, 0, 1, 0], [], []>} : vector<8x8xbf16>, vector<8x8xbf16>, vector<8x8xf32> -> vector<8x8xf32>
      %22 = tpu.iota {dimensions = array<i32: 0>} : vector<8x8xi32>
      %23 = vector.broadcast %3 : i32 to vector<8x8xi32>
      %24 = arith.addi %23, %22 : vector<8x8xi32>
      %25 = tpu.iota {dimensions = array<i32: 1>} : vector<8x8xi32>
      %26 = vector.broadcast %4 : i32 to vector<8x8xi32>
      %27 = arith.addi %26, %25 : vector<8x8xi32>
      %28 = arith.cmpi sle, %27, %24 : vector<8x8xi32>
      %cst_18 = arith.constant -1.000000e+30 : f32
      %29 = vector.broadcast %cst_18 : f32 to vector<8x8xf32>
      %30 = arith.select %28, %21, %29 : vector<8x8xi1>, vector<8x8xf32>
      %c0_19 = arith.constant 0 : index
      %c0_20 = arith.constant 0 : index
      %31 = vector.load %arg7[%c0_19, %c0_20] : memref<8x1xf32, #tpu.memory_space<vmem>>, vector<8x1xf32>
      %cst_21 = arith.constant dense<0xFF800000> : vector<8xf32>
      %32 = vector.multi_reduction <maximumf>, %30, %cst_21 [1] : vector<8x8xf32> to vector<8xf32>
      %33 = vector.shape_cast %32 : vector<8xf32> to vector<8x1xf32>
      %34 = arith.maximumf %31, %33 : vector<8x1xf32>
      %35 = arith.subf %31, %34 : vector<8x1xf32>
      %36 = math.exp %35 : vector<8x1xf32>
      %37 = vector.broadcast %34 : vector<8x1xf32> to vector<8x8xf32>
      %38 = arith.subf %30, %37 : vector<8x8xf32>
      %39 = math.exp %38 : vector<8x8xf32>
      %c0_22 = arith.constant 0 : index
      %c0_23 = arith.constant 0 : index
      %40 = vector.load %arg8[%c0_22, %c0_23] : memref<8x1xf32, #tpu.memory_space<vmem>>, vector<8x1xf32>
      %41 = arith.mulf %36, %40 : vector<8x1xf32>
      %cst_24 = arith.constant dense<0.000000e+00> : vector<8xf32>
      %42 = vector.multi_reduction <add>, %39, %cst_24 [1] : vector<8x8xf32> to vector<8xf32>
      %43 = vector.shape_cast %42 : vector<8xf32> to vector<8x1xf32>
      %44 = arith.addf %41, %43 : vector<8x1xf32>
      %c0_25 = arith.constant 0 : index
      %c0_26 = arith.constant 0 : index
      %45 = vector.load %arg8[%c0_25, %c0_26] : memref<8x1xf32, #tpu.memory_space<vmem>>, vector<8x1xf32>
      tpu.vector_store %arg8[%c0_25, %c0_26], %44 {strides = array<i32>} : memref<8x1xf32, #tpu.memory_space<vmem>>, vector<8x1xf32>,
      %c0_27 = arith.constant 0 : index
      %c0_28 = arith.constant 0 : index
      %46 = vector.load %arg9[%c0_27, %c0_28] : memref<8x8xf32, #tpu.memory_space<vmem>>, vector<8x8xf32>
      %47 = vector.broadcast %36 : vector<8x1xf32> to vector<8x8xf32>
      %48 = arith.mulf %47, %46 : vector<8x8xf32>
      %49 = arith.truncf %39 : vector<8x8xf32> to vector<8x8xbf16>
      %cst_29 = arith.constant dense<0.000000e+00> : vector<8x8xf32>
      %50 = tpu.matmul %49, %20, %cst_29 {dimension_numbers = #tpu.dot_dimension_numbers<[1], [0], [0], [1], [0, 0, 1, 1], [], []>} : vector<8x8xbf16>, vector<8x8xbf16>, vector<8x8xf32> -> vector<8x8xf32>
      %51 = arith.addf %48, %50 : vector<8x8xf32>
      %c0_30 = arith.constant 0 : index
      %c0_31 = arith.constant 0 : index
      %52 = vector.load %arg9[%c0_30, %c0_31] : memref<8x8xf32, #tpu.memory_space<vmem>>, vector<8x8xf32>
      tpu.vector_store %arg9[%c0_30, %c0_31], %51 {strides = array<i32>} : memref<8x8xf32, #tpu.memory_space<vmem>>, vector<8x8xf32>,
      %c0_32 = arith.constant 0 : index
      %c0_33 = arith.constant 0 : index
      %53 = vector.load %arg7[%c0_32, %c0_33] : memref<8x1xf32, #tpu.memory_space<vmem>>, vector<8x1xf32>
      tpu.vector_store %arg7[%c0_32, %c0_33], %34 {strides = array<i32>} : memref<8x1xf32, #tpu.memory_space<vmem>>, vector<8x1xf32>,
    } else {
    }
    %c0_i32_4 = arith.constant 0 : i32
    %10 = arith.cmpi eq, %arg2, %c0_i32_4 : i32
    %11 = arith.extui %10 : i1 to i32
    %c0_i32_5 = arith.constant 0 : i32
    %12 = arith.cmpi ne, %11, %c0_i32_5 : i32
    scf.if %12 {
      %c0 = arith.constant 0 : index
      %c0_6 = arith.constant 0 : index
      %13 = vector.load %arg8[%c0, %c0_6] : memref<8x1xf32, #tpu.memory_space<vmem>>, vector<8x1xf32>
      %14 = tpu.reciprocal %13 {approx = true} : vector<8x1xf32> -> vector<8x1xf32>
      %c0_7 = arith.constant 0 : index
      %c0_8 = arith.constant 0 : index
      %15 = vector.load %arg9[%c0_7, %c0_8] : memref<8x8xf32, #tpu.memory_space<vmem>>, vector<8x8xf32>
      %16 = vector.broadcast %14 : vector<8x1xf32> to vector<8x8xf32>
      %17 = arith.mulf %15, %16 : vector<8x8xf32>
      %18 = arith.truncf %17 : vector<8x8xf32> to vector<8x8xbf16>
      %c0_9 = arith.constant 0 : index
      %c0_10 = arith.constant 0 : index
      %c0_11 = arith.constant 0 : index
      %19 = vector.load %arg6[%c0_9, %c0_10, %c0_11] : memref<1x8x8xbf16, #tpu.memory_space<vmem>>, vector<1x8x8xbf16>
      %20 = vector.shape_cast %19 : vector<1x8x8xbf16> to vector<8x8xbf16>
      %21 = vector.shape_cast %18 : vector<8x8xbf16> to vector<1x8x8xbf16>
      tpu.vector_store %arg6[%c0_9, %c0_10, %c0_11], %21 {strides = array<i32>} : memref<1x8x8xbf16, #tpu.memory_space<vmem>>, vector<1x8x8xbf16>,
    } else {
    }
    return
  }
  func.func @transform_0(%arg0: i32, %arg1: i32, %arg2: i32) -> (i32, i32, i32, i32) {
    %c0_i32 = arith.constant 0 : i32
    %c0_i32_0 = arith.constant 0 : i32
    %c0_i32_1 = arith.constant 0 : i32
    return %c0_i32, %arg0, %arg1, %c0_i32_0 : i32, i32, i32, i32
  }
  func.func @transform_1(%arg0: i32, %arg1: i32, %arg2: i32) -> (i32, i32, i32, i32) {
    %c1_i32 = arith.constant 1 : i32
    %c0_i32 = arith.constant 0 : i32
    %c0_i32_0 = arith.constant 0 : i32
    return %c1_i32, %arg0, %arg2, %c0_i32 : i32, i32, i32, i32
  }
  func.func @transform_2(%arg0: i32, %arg1: i32, %arg2: i32) -> (i32, i32, i32, i32) {
    %c2_i32 = arith.constant 2 : i32
    %c0_i32 = arith.constant 0 : i32
    %c0_i32_0 = arith.constant 0 : i32
    return %c2_i32, %arg0, %arg2, %c0_i32 : i32, i32, i32, i32
  }
  func.func @transform_3(%arg0: i32, %arg1: i32, %arg2: i32) -> (i32, i32, i32) {
    %c0_i32 = arith.constant 0 : i32
    %c0_i32_0 = arith.constant 0 : i32
    return %arg0, %arg1, %c0_i32 : i32, i32, i32
  }
}

module attributes {stable_mosaic.version = 11 : i64} {
  func.func @_mm2d_kernel(%arg0: i32, %arg1: i32, %arg2: memref<16x32xbf16, #tpu.memory_space<vmem>>, %arg3: memref<32x32xbf16, #tpu.memory_space<vmem>>, %arg4: memref<1x32xf32, #tpu.memory_space<vmem>>, %arg5: memref<16x32xbf16, #tpu.memory_space<vmem>>, %arg6: memref<16x32xbf16, #tpu.memory_space<vmem>>) attributes {dimension_semantics = [#tpu.dimension_semantics<parallel>, #tpu.dimension_semantics<parallel>], iteration_bounds = array<i64: 1, 1>, scalar_prefetch = 0 : i64, scratch_operands = 0 : i64, tpu.core_type = #tpu.core_type<tc>, window_params = [{transform_indices = @transform_0, window_bounds = array<i64: 16, 32>}, {transform_indices = @transform_1, window_bounds = array<i64: 32, 32>}, {transform_indices = @transform_2, window_bounds = array<i64: 1, 32>}, {transform_indices = @transform_3, window_bounds = array<i64: 16, 32>}, {transform_indices = @transform_4, window_bounds = array<i64: 16, 32>}]} {
    %c0 = arith.constant 0 : index
    %c0_0 = arith.constant 0 : index
    %0 = vector.load %arg2[%c0, %c0_0] : memref<16x32xbf16, #tpu.memory_space<vmem>>, vector<16x32xbf16>
    %c0_1 = arith.constant 0 : index
    %c0_2 = arith.constant 0 : index
    %1 = vector.load %arg3[%c0_1, %c0_2] : memref<32x32xbf16, #tpu.memory_space<vmem>>, vector<32x32xbf16>
    %cst = arith.constant dense<0.000000e+00> : vector<16x32xf32>
    %2 = tpu.matmul %0, %1, %cst {dimension_numbers = #tpu.dot_dimension_numbers<[1], [0], [0], [1], [0, 0, 1, 1], [], []>} : vector<16x32xbf16>, vector<32x32xbf16>, vector<16x32xf32> -> vector<16x32xf32>
    %c0_3 = arith.constant 0 : index
    %c0_4 = arith.constant 0 : index
    %3 = vector.load %arg4[%c0_3, %c0_4] : memref<1x32xf32, #tpu.memory_space<vmem>>, vector<1x32xf32>
    %4 = vector.broadcast %3 : vector<1x32xf32> to vector<16x32xf32>
    %5 = arith.addf %2, %4 : vector<16x32xf32>
    %c0_5 = arith.constant 0 : index
    %c0_6 = arith.constant 0 : index
    %6 = vector.load %arg5[%c0_5, %c0_6] : memref<16x32xbf16, #tpu.memory_space<vmem>>, vector<16x32xbf16>
    %7 = arith.extf %6 : vector<16x32xbf16> to vector<16x32xf32>
    %8 = arith.addf %5, %7 : vector<16x32xf32>
    %9 = arith.truncf %8 : vector<16x32xf32> to vector<16x32xbf16>
    %c0_7 = arith.constant 0 : index
    %c0_8 = arith.constant 0 : index
    %10 = vector.load %arg6[%c0_7, %c0_8] : memref<16x32xbf16, #tpu.memory_space<vmem>>, vector<16x32xbf16>
    tpu.vector_store %arg6[%c0_7, %c0_8], %9 {strides = array<i32>} : memref<16x32xbf16, #tpu.memory_space<vmem>>, vector<16x32xbf16>,
    return
  }
  func.func @transform_0(%arg0: i32, %arg1: i32) -> (i32, i32) {
    %c0_i32 = arith.constant 0 : i32
    %c0_i32_0 = arith.constant 0 : i32
    return %arg0, %c0_i32 : i32, i32
  }
  func.func @transform_1(%arg0: i32, %arg1: i32) -> (i32, i32) {
    %c0_i32 = arith.constant 0 : i32
    %c0_i32_0 = arith.constant 0 : i32
    return %c0_i32, %arg1 : i32, i32
  }
  func.func @transform_2(%arg0: i32, %arg1: i32) -> (i32, i32) {
    %c0_i32 = arith.constant 0 : i32
    %c0_i32_0 = arith.constant 0 : i32
    return %c0_i32, %arg1 : i32, i32
  }
  func.func @transform_3(%arg0: i32, %arg1: i32) -> (i32, i32) {
    %c0_i32 = arith.constant 0 : i32
    return %arg0, %arg1 : i32, i32
  }
  func.func @transform_4(%arg0: i32, %arg1: i32) -> (i32, i32) {
    %c0_i32 = arith.constant 0 : i32
    return %arg0, %arg1 : i32, i32
  }
}

module attributes {stable_mosaic.version = 11 : i64} {
  func.func @_mm2d_kernel(%arg0: i32, %arg1: i32, %arg2: memref<16x32xbf16, #tpu.memory_space<vmem>>, %arg3: memref<32x128xbf16, #tpu.memory_space<vmem>>, %arg4: memref<1x128xf32, #tpu.memory_space<vmem>>, %arg5: memref<1x32xf32, #tpu.memory_space<vmem>>, %arg6: memref<1x32xf32, #tpu.memory_space<vmem>>, %arg7: memref<16x128xbf16, #tpu.memory_space<vmem>>, %arg8: memref<16x32xbf16, #tpu.memory_space<vmem>>) attributes {dimension_semantics = [#tpu.dimension_semantics<parallel>, #tpu.dimension_semantics<arbitrary>], iteration_bounds = array<i64: 1, 1>, scalar_prefetch = 0 : i64, scratch_operands = 1 : i64, tpu.core_type = #tpu.core_type<tc>, window_params = [{transform_indices = @transform_0, window_bounds = array<i64: 16, 32>}, {transform_indices = @transform_1, window_bounds = array<i64: 32, 128>}, {transform_indices = @transform_2, window_bounds = array<i64: 1, 128>}, {pipeline_mode = #tpu.pipeline_mode<synchronous>, transform_indices = @transform_3, window_bounds = array<i64: 1, 32>}, {pipeline_mode = #tpu.pipeline_mode<synchronous>, transform_indices = @transform_4, window_bounds = array<i64: 1, 32>}, {transform_indices = @transform_5, window_bounds = array<i64: 16, 128>}]} {
    %c0_i32 = arith.constant 0 : i32
    %0 = arith.cmpi eq, %arg1, %c0_i32 : i32
    %1 = arith.extui %0 : i1 to i32
    %c0_i32_0 = arith.constant 0 : i32
    %2 = arith.cmpi ne, %1, %c0_i32_0 : i32
    scf.if %2 {
      %c0_12 = arith.constant 0 : index
      %c0_13 = arith.constant 0 : index
      %24 = vector.load %arg2[%c0_12, %c0_13] : memref<16x32xbf16, #tpu.memory_space<vmem>>, vector<16x32xbf16>
      %25 = arith.extf %24 : vector<16x32xbf16> to vector<16x32xf32>
      %cst_14 = arith.constant dense<0.000000e+00> : vector<16xf32>
      %26 = vector.multi_reduction <add>, %25, %cst_14 [1] : vector<16x32xf32> to vector<16xf32>
      %27 = vector.shape_cast %26 : vector<16xf32> to vector<16x1xf32>
      %cst_15 = arith.constant 3.200000e+01 : f32
      %28 = vector.broadcast %cst_15 : f32 to vector<16x1xf32>
      %29 = arith.divf %27, %28 : vector<16x1xf32>
      %30 = vector.broadcast %29 : vector<16x1xf32> to vector<16x32xf32>
      %31 = arith.subf %25, %30 : vector<16x32xf32>
      %32 = arith.mulf %31, %31 : vector<16x32xf32>
      %cst_16 = arith.constant dense<0.000000e+00> : vector<16xf32>
      %33 = vector.multi_reduction <add>, %32, %cst_16 [1] : vector<16x32xf32> to vector<16xf32>
      %34 = vector.shape_cast %33 : vector<16xf32> to vector<16x1xf32>
      %cst_17 = arith.constant 3.200000e+01 : f32
      %35 = vector.broadcast %cst_17 : f32 to vector<16x1xf32>
      %36 = arith.divf %34, %35 : vector<16x1xf32>
      %37 = vector.broadcast %29 : vector<16x1xf32> to vector<16x32xf32>
      %38 = arith.subf %25, %37 : vector<16x32xf32>
      %cst_18 = arith.constant 9.99999974E-6 : f32
      %39 = vector.broadcast %cst_18 : f32 to vector<16x1xf32>
      %40 = arith.addf %36, %39 : vector<16x1xf32>
      %41 = math.rsqrt %40 : vector<16x1xf32>
      %42 = vector.broadcast %41 : vector<16x1xf32> to vector<16x32xf32>
      %43 = arith.mulf %38, %42 : vector<16x32xf32>
      %c0_19 = arith.constant 0 : index
      %c0_20 = arith.constant 0 : index
      %44 = vector.load %arg5[%c0_19, %c0_20] : memref<1x32xf32, #tpu.memory_space<vmem>>, vector<1x32xf32>
      %45 = vector.broadcast %44 : vector<1x32xf32> to vector<16x32xf32>
      %46 = arith.mulf %43, %45 : vector<16x32xf32>
      %c0_21 = arith.constant 0 : index
      %c0_22 = arith.constant 0 : index
      %47 = vector.load %arg6[%c0_21, %c0_22] : memref<1x32xf32, #tpu.memory_space<vmem>>, vector<1x32xf32>
      %48 = vector.broadcast %47 : vector<1x32xf32> to vector<16x32xf32>
      %49 = arith.addf %46, %48 : vector<16x32xf32>
      %50 = arith.truncf %49 : vector<16x32xf32> to vector<16x32xbf16>
      %c0_23 = arith.constant 0 : index
      %c0_24 = arith.constant 0 : index
      %51 = vector.load %arg8[%c0_23, %c0_24] : memref<16x32xbf16, #tpu.memory_space<vmem>>, vector<16x32xbf16>
      tpu.vector_store %arg8[%c0_23, %c0_24], %50 {strides = array<i32>} : memref<16x32xbf16, #tpu.memory_space<vmem>>, vector<16x32xbf16>,
    } else {
    }
    %c0 = arith.constant 0 : index
    %c0_1 = arith.constant 0 : index
    %3 = vector.load %arg8[%c0, %c0_1] : memref<16x32xbf16, #tpu.memory_space<vmem>>, vector<16x32xbf16>
    %c0_2 = arith.constant 0 : index
    %c0_3 = arith.constant 0 : index
    %4 = vector.load %arg3[%c0_2, %c0_3] : memref<32x128xbf16, #tpu.memory_space<vmem>>, vector<32x128xbf16>
    %cst = arith.constant dense<0.000000e+00> : vector<16x128xf32>
    %5 = tpu.matmul %3, %4, %cst {dimension_numbers = #tpu.dot_dimension_numbers<[1], [0], [0], [1], [0, 0, 1, 1], [], []>} : vector<16x32xbf16>, vector<32x128xbf16>, vector<16x128xf32> -> vector<16x128xf32>
    %c0_4 = arith.constant 0 : index
    %c0_5 = arith.constant 0 : index
    %6 = vector.load %arg4[%c0_4, %c0_5] : memref<1x128xf32, #tpu.memory_space<vmem>>, vector<1x128xf32>
    %7 = vector.broadcast %6 : vector<1x128xf32> to vector<16x128xf32>
    %8 = arith.addf %5, %7 : vector<16x128xf32>
    %9 = arith.mulf %8, %8 : vector<16x128xf32>
    %10 = arith.mulf %8, %9 : vector<16x128xf32>
    %cst_6 = arith.constant 4.471500e-02 : f32
    %11 = vector.broadcast %cst_6 : f32 to vector<16x128xf32>
    %12 = arith.mulf %11, %10 : vector<16x128xf32>
    %13 = arith.addf %8, %12 : vector<16x128xf32>
    %cst_7 = arith.constant 0.797884583 : f32
    %14 = vector.broadcast %cst_7 : f32 to vector<16x128xf32>
    %15 = arith.mulf %14, %13 : vector<16x128xf32>
    %16 = math.tanh %15 : vector<16x128xf32>
    %cst_8 = arith.constant 1.000000e+00 : f32
    %17 = vector.broadcast %cst_8 : f32 to vector<16x128xf32>
    %18 = arith.addf %17, %16 : vector<16x128xf32>
    %cst_9 = arith.constant 5.000000e-01 : f32
    %19 = vector.broadcast %cst_9 : f32 to vector<16x128xf32>
    %20 = arith.mulf %19, %18 : vector<16x128xf32>
    %21 = arith.mulf %8, %20 : vector<16x128xf32>
    %22 = arith.truncf %21 : vector<16x128xf32> to vector<16x128xbf16>
    %c0_10 = arith.constant 0 : index
    %c0_11 = arith.constant 0 : index
    %23 = vector.load %arg7[%c0_10, %c0_11] : memref<16x128xbf16, #tpu.memory_space<vmem>>, vector<16x128xbf16>
    tpu.vector_store %arg7[%c0_10, %c0_11], %22 {strides = array<i32>} : memref<16x128xbf16, #tpu.memory_space<vmem>>, vector<16x128xbf16>,
    return
  }
  func.func @transform_0(%arg0: i32, %arg1: i32) -> (i32, i32) {
    %c0_i32 = arith.constant 0 : i32
    %c0_i32_0 = arith.constant 0 : i32
    return %arg0, %c0_i32 : i32, i32
  }
  func.func @transform_1(%arg0: i32, %arg1: i32) -> (i32, i32) {
    %c0_i32 = arith.constant 0 : i32
    %c0_i32_0 = arith.constant 0 : i32
    return %c0_i32, %arg1 : i32, i32
  }
  func.func @transform_2(%arg0: i32, %arg1: i32) -> (i32, i32) {
    %c0_i32 = arith.constant 0 : i32
    %c0_i32_0 = arith.constant 0 : i32
    return %c0_i32, %arg1 : i32, i32
  }
  func.func @transform_3(%arg0: i32, %arg1: i32) -> (i32, i32) {
    %c0_i32 = arith.constant 0 : i32
    %c0_i32_0 = arith.constant 0 : i32
    %c0_i32_1 = arith.constant 0 : i32
    return %c0_i32, %c0_i32_0 : i32, i32
  }
  func.func @transform_4(%arg0: i32, %arg1: i32) -> (i32, i32) {
    %c0_i32 = arith.constant 0 : i32
    %c0_i32_0 = arith.constant 0 : i32
    %c0_i32_1 = arith.constant 0 : i32
    return %c0_i32, %c0_i32_0 : i32, i32
  }
  func.func @transform_5(%arg0: i32, %arg1: i32) -> (i32, i32) {
    %c0_i32 = arith.constant 0 : i32
    return %arg0, %arg1 : i32, i32
  }
}

module attributes {stable_mosaic.version = 11 : i64} {
  func.func @_mm2d_kernel(%arg0: i32, %arg1: i32, %arg2: memref<16x128xbf16, #tpu.memory_space<vmem>>, %arg3: memref<128x32xbf16, #tpu.memory_space<vmem>>, %arg4: memref<1x32xf32, #tpu.memory_space<vmem>>, %arg5: memref<16x32xbf16, #tpu.memory_space<vmem>>, %arg6: memref<16x32xbf16, #tpu.memory_space<vmem>>) attributes {dimension_semantics = [#tpu.dimension_semantics<parallel>, #tpu.dimension_semantics<parallel>], iteration_bounds = array<i64: 1, 1>, scalar_prefetch = 0 : i64, scratch_operands = 0 : i64, tpu.core_type = #tpu.core_type<tc>, window_params = [{transform_indices = @transform_0, window_bounds = array<i64: 16, 128>}, {transform_indices = @transform_1, window_bounds = array<i64: 128, 32>}, {transform_indices = @transform_2, window_bounds = array<i64: 1, 32>}, {transform_indices = @transform_3, window_bounds = array<i64: 16, 32>}, {transform_indices = @transform_4, window_bounds = array<i64: 16, 32>}]} {
    %c0 = arith.constant 0 : index
    %c0_0 = arith.constant 0 : index
    %0 = vector.load %arg2[%c0, %c0_0] : memref<16x128xbf16, #tpu.memory_space<vmem>>, vector<16x128xbf16>
    %c0_1 = arith.constant 0 : index
    %c0_2 = arith.constant 0 : index
    %1 = vector.load %arg3[%c0_1, %c0_2] : memref<128x32xbf16, #tpu.memory_space<vmem>>, vector<128x32xbf16>
    %cst = arith.constant dense<0.000000e+00> : vector<16x32xf32>
    %2 = tpu.matmul %0, %1, %cst {dimension_numbers = #tpu.dot_dimension_numbers<[1], [0], [0], [1], [0, 0, 1, 1], [], []>} : vector<16x128xbf16>, vector<128x32xbf16>, vector<16x32xf32> -> vector<16x32xf32>
    %c0_3 = arith.constant 0 : index
    %c0_4 = arith.constant 0 : index
    %3 = vector.load %arg4[%c0_3, %c0_4] : memref<1x32xf32, #tpu.memory_space<vmem>>, vector<1x32xf32>
    %4 = vector.broadcast %3 : vector<1x32xf32> to vector<16x32xf32>
    %5 = arith.addf %2, %4 : vector<16x32xf32>
    %c0_5 = arith.constant 0 : index
    %c0_6 = arith.constant 0 : index
    %6 = vector.load %arg5[%c0_5, %c0_6] : memref<16x32xbf16, #tpu.memory_space<vmem>>, vector<16x32xbf16>
    %7 = arith.extf %6 : vector<16x32xbf16> to vector<16x32xf32>
    %8 = arith.addf %5, %7 : vector<16x32xf32>
    %9 = arith.truncf %8 : vector<16x32xf32> to vector<16x32xbf16>
    %c0_7 = arith.constant 0 : index
    %c0_8 = arith.constant 0 : index
    %10 = vector.load %arg6[%c0_7, %c0_8] : memref<16x32xbf16, #tpu.memory_space<vmem>>, vector<16x32xbf16>
    tpu.vector_store %arg6[%c0_7, %c0_8], %9 {strides = array<i32>} : memref<16x32xbf16, #tpu.memory_space<vmem>>, vector<16x32xbf16>,
    return
  }
  func.func @transform_0(%arg0: i32, %arg1: i32) -> (i32, i32) {
    %c0_i32 = arith.constant 0 : i32
    %c0_i32_0 = arith.constant 0 : i32
    return %arg0, %c0_i32 : i32, i32
  }
  func.func @transform_1(%arg0: i32, %arg1: i32) -> (i32, i32) {
    %c0_i32 = arith.constant 0 : i32
    %c0_i32_0 = arith.constant 0 : i32
    return %c0_i32, %arg1 : i32, i32
  }
  func.func @transform_2(%arg0: i32, %arg1: i32) -> (i32, i32) {
    %c0_i32 = arith.constant 0 : i32
    %c0_i32_0 = arith.constant 0 : i32
    return %c0_i32, %arg1 : i32, i32
  }
  func.func @transform_3(%arg0: i32, %arg1: i32) -> (i32, i32) {
    %c0_i32 = arith.constant 0 : i32
    return %arg0, %arg1 : i32, i32
  }
  func.func @transform_4(%arg0: i32, %arg1: i32) -> (i32, i32) {
    %c0_i32 = arith.constant 0 : i32
    return %arg0, %arg1 : i32, i32
  }
}

module attributes {stable_mosaic.version = 11 : i64} {
  func.func @_mm2d_kernel(%arg0: i32, %arg1: i32, %arg2: memref<16x32xbf16, #tpu.memory_space<vmem>>, %arg3: memref<32x64xbf16, #tpu.memory_space<vmem>>, %arg4: memref<1x64xf32, #tpu.memory_space<vmem>>, %arg5: memref<1x32xf32, #tpu.memory_space<vmem>>, %arg6: memref<1x32xf32, #tpu.memory_space<vmem>>, %arg7: memref<16x64xf32, #tpu.memory_space<vmem>>, %arg8: memref<16x32xbf16, #tpu.memory_space<vmem>>) attributes {dimension_semantics = [#tpu.dimension_semantics<parallel>, #tpu.dimension_semantics<arbitrary>], iteration_bounds = array<i64: 1, 1>, scalar_prefetch = 0 : i64, scratch_operands = 1 : i64, tpu.core_type = #tpu.core_type<tc>, window_params = [{transform_indices = @transform_0, window_bounds = array<i64: 16, 32>}, {transform_indices = @transform_1, window_bounds = array<i64: 32, 64>}, {transform_indices = @transform_2, window_bounds = array<i64: 1, 64>}, {pipeline_mode = #tpu.pipeline_mode<synchronous>, transform_indices = @transform_3, window_bounds = array<i64: 1, 32>}, {pipeline_mode = #tpu.pipeline_mode<synchronous>, transform_indices = @transform_4, window_bounds = array<i64: 1, 32>}, {transform_indices = @transform_5, window_bounds = array<i64: 16, 64>}]} {
    %c0_i32 = arith.constant 0 : i32
    %0 = arith.cmpi eq, %arg1, %c0_i32 : i32
    %1 = arith.extui %0 : i1 to i32
    %c0_i32_0 = arith.constant 0 : i32
    %2 = arith.cmpi ne, %1, %c0_i32_0 : i32
    scf.if %2 {
      %c0_8 = arith.constant 0 : index
      %c0_9 = arith.constant 0 : index
      %10 = vector.load %arg2[%c0_8, %c0_9] : memref<16x32xbf16, #tpu.memory_space<vmem>>, vector<16x32xbf16>
      %11 = arith.extf %10 : vector<16x32xbf16> to vector<16x32xf32>
      %cst_10 = arith.constant dense<0.000000e+00> : vector<16xf32>
      %12 = vector.multi_reduction <add>, %11, %cst_10 [1] : vector<16x32xf32> to vector<16xf32>
      %13 = vector.shape_cast %12 : vector<16xf32> to vector<16x1xf32>
      %cst_11 = arith.constant 3.200000e+01 : f32
      %14 = vector.broadcast %cst_11 : f32 to vector<16x1xf32>
      %15 = arith.divf %13, %14 : vector<16x1xf32>
      %16 = vector.broadcast %15 : vector<16x1xf32> to vector<16x32xf32>
      %17 = arith.subf %11, %16 : vector<16x32xf32>
      %18 = arith.mulf %17, %17 : vector<16x32xf32>
      %cst_12 = arith.constant dense<0.000000e+00> : vector<16xf32>
      %19 = vector.multi_reduction <add>, %18, %cst_12 [1] : vector<16x32xf32> to vector<16xf32>
      %20 = vector.shape_cast %19 : vector<16xf32> to vector<16x1xf32>
      %cst_13 = arith.constant 3.200000e+01 : f32
      %21 = vector.broadcast %cst_13 : f32 to vector<16x1xf32>
      %22 = arith.divf %20, %21 : vector<16x1xf32>
      %23 = vector.broadcast %15 : vector<16x1xf32> to vector<16x32xf32>
      %24 = arith.subf %11, %23 : vector<16x32xf32>
      %cst_14 = arith.constant 9.99999974E-6 : f32
      %25 = vector.broadcast %cst_14 : f32 to vector<16x1xf32>
      %26 = arith.addf %22, %25 : vector<16x1xf32>
      %27 = math.rsqrt %26 : vector<16x1xf32>
      %28 = vector.broadcast %27 : vector<16x1xf32> to vector<16x32xf32>
      %29 = arith.mulf %24, %28 : vector<16x32xf32>
      %c0_15 = arith.constant 0 : index
      %c0_16 = arith.constant 0 : index
      %30 = vector.load %arg5[%c0_15, %c0_16] : memref<1x32xf32, #tpu.memory_space<vmem>>, vector<1x32xf32>
      %31 = vector.broadcast %30 : vector<1x32xf32> to vector<16x32xf32>
      %32 = arith.mulf %29, %31 : vector<16x32xf32>
      %c0_17 = arith.constant 0 : index
      %c0_18 = arith.constant 0 : index
      %33 = vector.load %arg6[%c0_17, %c0_18] : memref<1x32xf32, #tpu.memory_space<vmem>>, vector<1x32xf32>
      %34 = vector.broadcast %33 : vector<1x32xf32> to vector<16x32xf32>
      %35 = arith.addf %32, %34 : vector<16x32xf32>
      %36 = arith.truncf %35 : vector<16x32xf32> to vector<16x32xbf16>
      %c0_19 = arith.constant 0 : index
      %c0_20 = arith.constant 0 : index
      %37 = vector.load %arg8[%c0_19, %c0_20] : memref<16x32xbf16, #tpu.memory_space<vmem>>, vector<16x32xbf16>
      tpu.vector_store %arg8[%c0_19, %c0_20], %36 {strides = array<i32>} : memref<16x32xbf16, #tpu.memory_space<vmem>>, vector<16x32xbf16>,
    } else {
    }
    %c0 = arith.constant 0 : index
    %c0_1 = arith.constant 0 : index
    %3 = vector.load %arg8[%c0, %c0_1] : memref<16x32xbf16, #tpu.memory_space<vmem>>, vector<16x32xbf16>
    %c0_2 = arith.constant 0 : index
    %c0_3 = arith.constant 0 : index
    %4 = vector.load %arg3[%c0_2, %c0_3] : memref<32x64xbf16, #tpu.memory_space<vmem>>, vector<32x64xbf16>
    %cst = arith.constant dense<0.000000e+00> : vector<16x64xf32>
    %5 = tpu.matmul %3, %4, %cst {dimension_numbers = #tpu.dot_dimension_numbers<[1], [0], [0], [1], [0, 0, 1, 1], [], []>} : vector<16x32xbf16>, vector<32x64xbf16>, vector<16x64xf32> -> vector<16x64xf32>
    %c0_4 = arith.constant 0 : index
    %c0_5 = arith.constant 0 : index
    %6 = vector.load %arg4[%c0_4, %c0_5] : memref<1x64xf32, #tpu.memory_space<vmem>>, vector<1x64xf32>
    %7 = vector.broadcast %6 : vector<1x64xf32> to vector<16x64xf32>
    %8 = arith.addf %5, %7 : vector<16x64xf32>
    %c0_6 = arith.constant 0 : index
    %c0_7 = arith.constant 0 : index
    %9 = vector.load %arg7[%c0_6, %c0_7] : memref<16x64xf32, #tpu.memory_space<vmem>>, vector<16x64xf32>
    tpu.vector_store %arg7[%c0_6, %c0_7], %8 {strides = array<i32>} : memref<16x64xf32, #tpu.memory_space<vmem>>, vector<16x64xf32>,
    return
  }
  func.func @transform_0(%arg0: i32, %arg1: i32) -> (i32, i32) {
    %c0_i32 = arith.constant 0 : i32
    %c0_i32_0 = arith.constant 0 : i32
    return %arg0, %c0_i32 : i32, i32
  }
  func.func @transform_1(%arg0: i32, %arg1: i32) -> (i32, i32) {
    %c0_i32 = arith.constant 0 : i32
    %c0_i32_0 = arith.constant 0 : i32
    return %c0_i32, %arg1 : i32, i32
  }
  func.func @transform_2(%arg0: i32, %arg1: i32) -> (i32, i32) {
    %c0_i32 = arith.constant 0 : i32
    %c0_i32_0 = arith.constant 0 : i32
    return %c0_i32, %arg1 : i32, i32
  }
  func.func @transform_3(%arg0: i32, %arg1: i32) -> (i32, i32) {
    %c0_i32 = arith.constant 0 : i32
    %c0_i32_0 = arith.constant 0 : i32
    %c0_i32_1 = arith.constant 0 : i32
    return %c0_i32, %c0_i32_0 : i32, i32
  }
  func.func @transform_4(%arg0: i32, %arg1: i32) -> (i32, i32) {
    %c0_i32 = arith.constant 0 : i32
    %c0_i32_0 = arith.constant 0 : i32
    %c0_i32_1 = arith.constant 0 : i32
    return %c0_i32, %c0_i32_0 : i32, i32
  }
  func.func @transform_5(%arg0: i32, %arg1: i32) -> (i32, i32) {
    %c0_i32 = arith.constant 0 : i32
    return %arg0, %arg1 : i32, i32
  }
}

</mosaic_0001>

<bundles_post_ra>
// kernel: gpt_forward.12
= control target key start
LH: loop header
LB: loop body
LE: loop exit
PB: predicated region body
PF: predicated region fallthrough
CT: control target
= control target key end

     0   :  { %s986_s0 = inlined_call_operand.vmem [shape: s32[16], index: 0, kind: input, shape index: {}]   ;;  %s987_s1 = inlined_call_operand.vmem [shape: f32[64,32], index: 1, kind: input, shape index: {}]   ;;  %s988_s2 = inlined_call_operand.vmem [shape: f32[1,8,32], index: 2, kind: input, shape index: {}]   ;;  %s989_s3 = inlined_call_operand.vmem [shape: bf16[2,8,32], index: 3, kind: output, shape index: {}]  }
   0x1   :  { %s8_s14 = sshll.u32 %s986_s0, 4  ;;  %s9_s14 = int_to_ptr.vmem [resolvable:$true] %s8_s14 }
   0x2   :  { %s838_s15 = scalar_lea.vmem %s9_s14, 16  ;;  %p843_p1 = scmp.lt.s32.totalorder %s9_s14, %s9_s14 }
   0x3   :  { %p839_p0 = scmp.ne.s32.totalorder %s9_s14, %s838_s15  ;;  %p844_p2 = scmp.lt.s32.totalorder %s838_s15, %s838_s15 }
   0x5   :  { %p845_p3 = por %p844_p2, %p843_p1 }
   0x7   :  { %p846_p4 = pnand %p845_p3, %p839_p0 }
   0x9   :  { %849 = shalt.err (!%p846_p4)  }
   0xa   :  { %s892_s16 = smov [#allocation5]  }
   0xb   :  { %11 = dma.vmem_to_smem %s9_s14, 16, %s892_s16, [#allocation4] }
   0xc   :  { %862 = dma.done.wait [#allocation4], 16 }
   0xd   :  { %863 = vsyncadd [#allocation4], 4294967280 }
   0xe   :  { %13 = sfence }
   0xf   :  { %s916_s17 = smov 0   ;;  %s918_s18 = smov 0  }
  0x10   :  { %s920_s19 = smov 0  }
  0x11 LB: > { %s31_s0 = sadd.s32 1, %s886_s18  ;;  %p800_p5 = scmp.ge.s32.totalorder %s890_s19, 1  ;;  %s890_s19 = sphi %s920_s19, %s19_s19   ;;  %s886_s18 = sphi %s918_s18, %s991_s18   ;;  %s882_s17 = sphi %s916_s17, %s990_s17  }
  0x12   : > { %p33_p6 = scmp.ge.s32.totalorder %s31_s0, 2  ;;  %p108_p7 = scmp.lt.s32.totalorder %s890_s19, 3 }
  0x14   : > { %s993_s0 = smov (%p33_p6, %s31_s0), 0  ;;  %p109_p8 = pnand %p800_p5, %p108_p7 }
  0x15   : > { %p133_p9 = scmp.lt.s32.totalorder (!%p109_p8), %s882_s17, 1  ;;  %s934_s20 = sshll.u32 (!%p109_p8), %s882_s17, 3 }
  0x16   : > { %112 = sbr.rel (%p109_p8) target bundleno = 124 (0x7c), region = 24  ;;  %s143_s21 = sld [smem:[#allocation5 + %s934_s20]] (!%p109_p8) }
  0x1b   : > { %s995_s17 = smov (!%p133_p9, %s882_s17), 1 }
  0x1c   : > { %s801_s22 = sshll.u32 %s995_s17, 2  ;;  %s144_s28 = scalar_lea.vmem %s987_s1, %s143_s21 }
  0x1d   : > { %s940_s25 = scalar_lea.vmem %s989_s3, %s801_s22  ;;  %v163_v0 = vld [vmem:[%s144_s28] sm:$0x1] }
  0x1e   : > { %164 = vst [vmem:[#allocation2] sm:$0x1] %v163_v0 }
  0x1f   : > { %190 = vsyncadd [#allocation3], 16  ;;  %s191_s29 = sadd.s32 1, %s934_s20 }
  0x20   : > { %s192_s30 = sld [smem:[#allocation5 + %s191_s29]] }
  0x26   : > { %s193_s6 = scalar_lea.vmem %s987_s1, %s192_s30 }
  0x27   : > { %v214_v1 = vld [vmem:[%s193_s6] sm:$0x1] }
  0x28   : > { %215 = vst [vmem:[#allocation2 + $0x1] sm:$0x1] %v214_v1 }
  0x29   : > { %241 = vsyncadd [#allocation3 + $0x1], 16  ;;  %s242_s7 = sadd.s32 2, %s934_s20 }
  0x2a   : > { %s243_s8 = sld [smem:[#allocation5 + %s242_s7]] }
  0x30   : > { %s244_s11 = scalar_lea.vmem %s987_s1, %s243_s8 }
  0x31   : > { %v265_v2 = vld [vmem:[%s244_s11] sm:$0x1] }
  0x32   : > { %266 = vst [vmem:[#allocation2 + $0x2] sm:$0x1] %v265_v2 }
  0x33   : > { %292 = vsyncadd [#allocation3 + $0x2], 16  ;;  %s293_s12 = sadd.s32 3, %s934_s20 }
  0x34   : > { %s294_s13 = sld [smem:[#allocation5 + %s293_s12]] }
  0x3a   : > { %s295_s16 = scalar_lea.vmem %s987_s1, %s294_s13 }
  0x3b   : > { %v316_v3 = vld [vmem:[%s295_s16] sm:$0x1] }
  0x3c   : > { %317 = vst [vmem:[#allocation2 + $0x3] sm:$0x1] %v316_v3 }
  0x3d   : > { %343 = vsyncadd [#allocation3 + $0x3], 16  ;;  %s344_s17 = sadd.s32 4, %s934_s20 }
  0x3e   : > { %s345_s21 = sld [smem:[#allocation5 + %s344_s17]] }
  0x44   : > { %s346_s24 = scalar_lea.vmem %s987_s1, %s345_s21 }
  0x45   : > { %v367_v4 = vld [vmem:[%s346_s24] sm:$0x1] }
  0x46   : > { %368 = vst [vmem:[#allocation2 + $0x4] sm:$0x1] %v367_v4 }
  0x47   : > { %394 = vsyncadd [#allocation3 + $0x4], 16  ;;  %s395_s26 = sadd.s32 5, %s934_s20 }
  0x48   : > { %s396_s27 = sld [smem:[#allocation5 + %s395_s26]] }
  0x4e   : > { %s397_s30 = scalar_lea.vmem %s987_s1, %s396_s27 }
  0x4f   : > { %v418_v5 = vld [vmem:[%s397_s30] sm:$0x1] }
  0x50   : > { %419 = vst [vmem:[#allocation2 + $0x5] sm:$0x1] %v418_v5 }
  0x51   : > { %445 = vsyncadd [#allocation3 + $0x5], 16  ;;  %s446_s4 = sadd.s32 6, %s934_s20 }
  0x52   : > { %s447_s5 = sld [smem:[#allocation5 + %s446_s4]] }
  0x58   : > { %s448_s8 = scalar_lea.vmem %s987_s1, %s447_s5 }
  0x59   : > { %v469_v6 = vld [vmem:[%s448_s8] sm:$0x1] }
  0x5a   : > { %470 = vst [vmem:[#allocation2 + $0x6] sm:$0x1] %v469_v6 }
  0x5b   : > { %496 = vsyncadd [#allocation3 + $0x6], 16  ;;  %s497_s9 = sadd.s32 7, %s934_s20 }
  0x5c   : > { %s498_s10 = sld [smem:[#allocation5 + %s497_s9]] }
  0x62   : > { %s499_s13 = scalar_lea.vmem %s987_s1, %s498_s10 }
  0x63   : > { %v520_v7 = vld [vmem:[%s499_s13] sm:$0x1] }
  0x64   : > { %521 = vst [vmem:[#allocation2 + $0x7] sm:$0x1] %v520_v7 }
  0x65   : > { %547 = vsyncadd [#allocation3 + $0x7], 16 }
  0x66   : > { %864 = dma.done.wait [#allocation3], 16 }
  0x67   : > { %865 = vsyncadd [#allocation3], 4294967280 }
  0x68   : > { %866 = dma.done.wait [#allocation3 + $0x1], 16 }
  0x69   : > { %867 = vsyncadd [#allocation3 + $0x1], 4294967280 }
  0x6a   : > { %868 = dma.done.wait [#allocation3 + $0x2], 16 }
  0x6b   : > { %869 = vsyncadd [#allocation3 + $0x2], 4294967280 }
  0x6c   : > { %870 = dma.done.wait [#allocation3 + $0x3], 16 }
  0x6d   : > { %871 = vsyncadd [#allocation3 + $0x3], 4294967280 }
  0x6e   : > { %872 = dma.done.wait [#allocation3 + $0x4], 16 }
  0x6f   : > { %873 = vsyncadd [#allocation3 + $0x4], 4294967280 }
  0x70   : > { %874 = dma.done.wait [#allocation3 + $0x5], 16 }
  0x71   : > { %875 = vsyncadd [#allocation3 + $0x5], 4294967280 }
  0x72   : > { %876 = dma.done.wait [#allocation3 + $0x6], 16 }
  0x73   : > { %877 = vsyncadd [#allocation3 + $0x6], 4294967280 }
  0x74   : > { %878 = dma.done.wait [#allocation3 + $0x7], 16 }
  0x75   : > { %879 = vsyncadd [#allocation3 + $0x7], 4294967280  ;;  %v565_v8 = vld [vmem:[#allocation2] sm:$0xff]  ;;  %vm569_vm0 = vcmask 257024  }
  0x76   : > { %v566_v9 = vld [vmem:[%s988_s2] sm:$0xff] }
  0x77   : > { %v567_v10 = vadd.f32 %v566_v9, %v565_v8 }
  0x79   : > { %v568_v11 = vpack.c.bf16 %v567_v10, %v567_v10 }
  0x7b   : > { %570 = vst.msk [vmem:[%s940_s25] sm:$0xf] %vm569_vm0, %v568_v11 }
  0x7c PF: > { %s19_s19 = sadd.s32 1, %s890_s19   ;;  %s990_s17 = smov %s886_s18 }
  0x7d   : > { %p16_p10 = scmp.ge.s32.totalorder %s19_s19, 4   ;;  %s991_s18 = smov %s993_s0 }
  0x7f   :  { %18 = sbr.rel (!%p16_p10) target bundleno = 17 (0x11), region = 403 }
  0x84   :  { %596 = vsyncmov [#allocation3] }
  0x87   :  { %s597_s15 = vpop.sfrf %596 }
  0x88   :  { %p805_p11 = scmp.ne.s32.totalorder %s597_s15, 0 }
  0x8a   :  { %601 = shalt.err (%p805_p11)  }
  0x8b   :  { %603 = vsyncmov [#allocation3 + $0x1] }
  0x8e   :  { %s604_s16 = vpop.sfrf %603 }
  0x8f   :  { %p806_p12 = scmp.ne.s32.totalorder %s604_s16, 0 }
  0x91   :  { %608 = shalt.err (%p806_p12)  }
  0x92   :  { %610 = vsyncmov [#allocation3 + $0x2] }
  0x95   :  { %s611_s25 = vpop.sfrf %610 }
  0x96   :  { %p807_p13 = scmp.ne.s32.totalorder %s611_s25, 0 }
  0x98   :  { %615 = shalt.err (%p807_p13)  }
  0x99   :  { %617 = vsyncmov [#allocation3 + $0x3] }
  0x9c   :  { %s618_s21 = vpop.sfrf %617 }
  0x9d   :  { %p808_p0 = scmp.ne.s32.totalorder %s618_s21, 0 }
  0x9f   :  { %622 = shalt.err (%p808_p0)  }
  0xa0   :  { %624 = vsyncmov [#allocation3 + $0x4] }
  0xa3   :  { %s625_s0 = vpop.sfrf %624 }
  0xa4   :  { %p809_p1 = scmp.ne.s32.totalorder %s625_s0, 0 }
  0xa6   :  { %629 = shalt.err (%p809_p1)  }
  0xa7   :  { %631 = vsyncmov [#allocation3 + $0x5] }
  0xaa   :  { %s632_s1 = vpop.sfrf %631 }
  0xab   :  { %p810_p2 = scmp.ne.s32.totalorder %s632_s1, 0 }
  0xad   :  { %636 = shalt.err (%p810_p2)  }
  0xae   :  { %638 = vsyncmov [#allocation3 + $0x6] }
  0xb1   :  { %s639_s2 = vpop.sfrf %638 }
  0xb2   :  { %p811_p3 = scmp.ne.s32.totalorder %s639_s2, 0 }
  0xb4   :  { %643 = shalt.err (%p811_p3)  }
  0xb5   :  { %645 = vsyncmov [#allocation3 + $0x7] }
  0xb8   :  { %s646_s3 = vpop.sfrf %645 }
  0xb9   :  { %p812_p4 = scmp.ne.s32.totalorder %s646_s3, 0 }
  0xbb   :  { %650 = shalt.err (%p812_p4)  }

// kernel: gpt_forward.13
= control target key start
LH: loop header
LB: loop body
LE: loop exit
PB: predicated region body
PF: predicated region fallthrough
CT: control target
= control target key end

     0   :  { %vm29_vm0 = vcmask 261120   ;;  %v215_v16 = vmov 0.0   ;;  %vm216_vm1 = vmmov 0   ;;  %vm83_vm2 = vcmask 257024   ;;  %s276_s0 = inlined_call_operand.vmem [shape: bf16[16,32], index: 0, kind: input, shape index: {}]   ;;  %s277_s1 = inlined_call_operand.vmem [shape: bf16[32,96], index: 1, kind: input, shape index: {}]   ;;  %s278_s3 = inlined_call_operand.vmem [shape: f32[1,32], index: 3, kind: input, shape index: {}]   ;;  %s279_s4 = inlined_call_operand.vmem [shape: f32[1,32], index: 4, kind: input, shape index: {}]   ;;  %s280_s2 = inlined_call_operand.vmem [shape: f32[1,96], index: 2, kind: input, shape index: {}]   ;;  %s281_s5 = inlined_call_operand.vmem [shape: bf16[16,96], index: 5, kind: output, shape index: {}]  }
   0x1   :  { %v192_v0 = vld [vmem:[%s276_s0] sm:$0xff]   ;;  %v208_v15 = vld [vmem:[%s277_s1 + $0x8] sm:$0xff]   ;;  %198 = vmatprep.subr.bf16.mxu0 %v215_v16  ;;  %202 = vmatprep.mubr.msk.bf16.mxu0 %vm216_vm1, %v215_v16  ;;  %vm169_vm3 = vcmask 781312  }
   0x2   :  { %v193_v1 = vunpack.c.l.bf16 %v192_v0  ;;  %v194_v2 = vunpack.c.h.bf16 %v192_v0  ;;  %199 = vmatpush3.bf16.msra.mxu0 %v208_v15  ;;  %v209_v17 = vld [vmem:[%s277_s1] sm:$0xff]  }
   0x3   :  { %200 = vmatprep.subr.bf16.mxu0 %v215_v16  ;;  %v176_v25 = vld [vmem:[%s278_s3] ss:$0 sm:$0xff] }
   0x4   :  { %v30_v3 = vsel %vm29_vm0, %v193_v1, 0.0  ;;  %v33_v4 = vsel %vm29_vm0, %v194_v2, 0.0  ;;  %v177_v27 = vld [vmem:[%s279_s4] ss:$0 sm:$0xff] }
   0x5   :  { %31 = vadd.xlane.f32.xlu0 %v30_v3  ;;  %v180_v37 = vld [vmem:[%s280_s2] ss:$0 sm:$0xff] }
   0x6   :  { %201 = vmatpush3.bf16.msra.mxu0 %v209_v17 }
   0x9   :  { %34 = vadd.xlane.f32.xlu0 %v33_v4 }
  0x8e   :  { %v32_v5 = vpop.xlane.xlu0 %31 }
  0x8f   :  { %v37_v6 = vmul.f32 0.03125, %v32_v5 }
  0x91   :  { %v39_v7 = vsub.f32 %v193_v1, %v37_v6 }
  0x92   :  { %v35_v8 = vpop.xlane.xlu0 %34 }
  0x93   :  { %v38_v9 = vmul.f32 0.03125, %v35_v8  ;;  %v41_v10 = vmul.f32 %v39_v7, %v39_v7 }
  0x95   :  { %v40_v11 = vsub.f32 %v194_v2, %v38_v9  ;;  %v43_v12 = vsel %vm29_vm0, %v41_v10, 0.0 }
  0x96   :  { %44 = vadd.xlane.f32.xlu1 %v43_v12 }
  0x97   :  { %v42_v13 = vmul.f32 %v40_v11, %v40_v11 }
  0x99   :  { %v46_v14 = vsel %vm29_vm0, %v42_v13, 0.0 }
  0x9a   :  { %47 = vadd.xlane.f32.xlu1 %v46_v14 }
 0x11f   :  { %v45_v18 = vpop.xlane.xlu1 %44 }
 0x120   :  { %v49_v19 = vmul.f32 0.03125, %v45_v18 }
 0x122   :  { %v51_v20 = vadd.f32 1e-05, %v49_v19 }
 0x123   :  { %v48_v21 = vpop.xlane.xlu1 %47 }
 0x124   :  { %211 = vrsqrt.f32 %v51_v20  ;;  %v50_v22 = vmul.f32 0.03125, %v48_v21 }
 0x126   :  { %v52_v23 = vadd.f32 1e-05, %v50_v22 }
 0x128   :  { %213 = vrsqrt.f32 %v52_v23 }
 0x131   :  { %v212_v24 = vpop.eup %211 }
 0x132   :  { %v55_v26 = vmul.f32 %v212_v24, %v39_v7 }
 0x134   :  { %v64_v28 = vmul.f32 %v176_v25, %v55_v26 }
 0x135   :  { %v214_v29 = vpop.eup %213 }
 0x136   :  { %v73_v30 = vadd.f32 %v177_v27, %v64_v28  ;;  %v56_v31 = vmul.f32 %v214_v29, %v40_v11 }
 0x138   :  { %v187_v32 = vpack.c.bf16 %v73_v30, %v73_v30  ;;  %v65_v33 = vmul.f32 %v176_v25, %v56_v31 }
 0x13a   :  { %84 = vst.msk [vmem:[#allocation2] sm:$0xf] %vm83_vm2, %v187_v32  ;;  %v74_v34 = vadd.f32 %v177_v27, %v65_v33 }
 0x13c   :  { %v188_v35 = vpack.c.bf16 %v74_v34, %v74_v34 }
 0x13e   :  { %85 = vst.msk [vmem:[#allocation2 + $0x4] sm:$0xf] %vm83_vm2, %v188_v35 }
 0x145   :  { %v210_v36 = vld [vmem:[#allocation2] sm:$0xff]  }
 0x146   :  { %203 = vmatmul.mubr.msk.bf16.vlgmr.msra.gmra.mxu0 %vm29_vm0, %v210_v36 }
 0x206   :  { %v154_v38 = vpop.f32.mrf.mxu0 }
 0x207   :  { %v155_v39 = vadd.f32 %v180_v37, %v154_v38 }
 0x208   :  { %v204_v40 = vpop.f32.mrf.mxu0 }
 0x209   :  { %v189_v41 = vpack.c.bf16 %v155_v39, %v155_v39 }
 0x20a   :  { %v157_v42 = vpop.f32.mrf.mxu0 }
 0x20b   :  { %170 = vst.msk [vmem:[%s281_s5] sm:$0xf] %vm169_vm3, %v189_v41  ;;  %v158_v43 = vadd.f32 %v180_v37, %v157_v42 }
 0x20c   :  { %v205_v44 = vpop.f32.mrf.mxu0 }
 0x20d   :  { %v190_v45 = vpack.c.bf16 %v158_v43, %v158_v43 }
 0x20f   :  { %171 = vst.msk [vmem:[%s281_s5 + $0x4] sm:$0xf] %vm169_vm3, %v190_v45 }

// kernel: gpt_forward.14
= control target key start
LH: loop header
LB: loop body
LE: loop exit
PB: predicated region body
PF: predicated region fallthrough
CT: control target
= control target key end

     0   :  { %s670_s12 = smov 0   ;;  %s672_s13 = smov 0   ;;  %s726_s0 = inlined_call_operand.vmem [shape: bf16[3,8,8,8], index: 0, kind: input, shape index: {}, may-alias: {0,1,2}]   ;;  %s727_s1 = inlined_call_operand.vmem [shape: bf16[3,8,8,8], index: 1, kind: input, shape index: {}, may-alias: {0,1,2}]   ;;  %s728_s2 = inlined_call_operand.vmem [shape: bf16[3,8,8,8], index: 2, kind: input, shape index: {}, may-alias: {0,1,2}]   ;;  %s729_s3 = inlined_call_operand.vmem [shape: bf16[8,8,8], index: 3, kind: output, shape index: {}]  }
   0x1   :  { %s674_s14 = smov 0  }
   0x2 LB: > { %s32_s15 = sadd.s32 1, %s640_s13  ;;  %p559_p0 = scmp.ge.s32.totalorder %s644_s14, 1  ;;  %s644_s14 = sphi %s674_s14, %s13_s14   ;;  %s640_s13 = sphi %s672_s13, %s731_s13   ;;  %s636_s12 = sphi %s670_s12, %s730_s12  }
   0x3   : > { %p34_p1 = scmp.ge.s32.totalorder %s32_s15, 8  ;;  %p192_p2 = scmp.lt.s32.totalorder %s644_s14, 9 }
   0x5   : > { %s733_s15 = smov (%p34_p1, %s32_s15), 0  ;;  %p193_p3 = pnand %p559_p0, %p192_p2 }
   0x6   : > { %p236_p4 = scmp.lt.s32.totalorder (!%p193_p3), %s636_s12, 7 }
   0x7   : > { %196 = sbr.rel (%p193_p3) target bundleno = 793 (0x319), region = 32 }
   0xc   : > { %vm275_vm0 = vcmask 64512   ;;  %v646_v0 = vmov 0.0   ;;  %vm647_vm1 = vmmov 0   ;;  %s735_s12 = smov (!%p236_p4, %s636_s12), 7  ;;  %vm272_vm2 = vcmask 7168  }
   0xd   : > { %574 = vmatprep.subr.bf16.mxu0 %v646_v0  ;;  %276 = vst.msk [vmem:[#allocation4] sm:$0xff] %vm275_vm0, %v646_v0  ;;  %576 = vmatprep.mubr.msk.bf16.mxu0 %vm647_vm1, %v646_v0  ;;  %s689_s16 = sshll.u32 %s735_s12, 2  ;;  %v648_v5 = vmov -1e+30   ;;  %v335_v6 = vlaneseq  ;;  %v649_v15 = vmov 0   ;;  %vm380_vm4 = vcmask 1043456  }
   0xe   : > { %580 = vmatprep.subr.bf16.mxu1 %v646_v0  ;;  %582 = vmatprep.mubr.msk.bf16.mxu1 %vm647_vm1, %v646_v0  ;;  %s497_s19 = scalar_lea.vmem %s727_s1, %s689_s16  ;;  %s242_s22 = scalar_lea.vmem %s726_s0, %s689_s16  ;;  %273 = vst.msk [vmem:[#allocation2] sm:$0xff] %vm272_vm2, %v648_v5  ;;  %274 = vst.msk [vmem:[#allocation3] sm:$0xff] %vm272_vm2, %v646_v0  ;;  %vm440_vm5 = vcmask 60416  }
   0xf   : > { %v564_v1 = vld [vmem:[%s497_s19 + $0x20] sm:$0xf]  ;;  %v336_v7 = vshrl.u32 %v335_v6, 7  ;;  %v340_v8 = vand.u32 127, %v335_v6  ;;  %614 = vset.pattern.permute.xlu0 %v649_v15  ;;  %615 = vset.pattern.permute.xlu1 %v649_v15  ;;  %s501_s25 = scalar_lea.vmem %s728_s2, %s689_s16  ;;  %s265_s28 = scalar_lea.vmem %s729_s3, %s689_s16 }
  0x10   : > { %v293_v2 = vsel %vm275_vm0, %v564_v1, 0  ;;  %v284_v3 = vld [vmem:[%s242_s22] sm:$0xf] }
  0x11   : > { %575 = vmatpush3.bf16.xpose.msra.mxu0 %v293_v2  ;;  %v285_v4 = vmul.bf16 1052065461, %v284_v3  ;;  %vm343_vm3 = vcmp.le.s32.totalorder %v340_v8, %v336_v7  ;;  %v565_v20 = vld [vmem:[%s501_s25 + $0x40] sm:$0xf] }
  0x12   : > { %v382_v21 = vsel %vm380_vm4, %v565_v20, 0 }
  0x13   : > { %581 = vmatpush3.bf16.msra.mxu1 %v382_v21 }
  0x14   : > { %v369_v36 = vld [vmem:[#allocation4] sm:$0xff] }
  0x15   : > { %v345_v16 = vld [vmem:[#allocation2] sm:$0xff]  ;;  %v361_v30 = vld [vmem:[#allocation3] sm:$0xff] }
  0x18   : > { %577 = vmatmul.mubr.msk.bf16.vlgmr.msra.gmra.mxu0 %vm275_vm0, %v285_v4 }
  0xd8   : > { %v329_v9 = vpop.f32.mrf.mxu0 }
  0xd9   : > { %v344_v10 = vsel %vm343_vm3, %v329_v9, -1e+30 }
  0xda   : > { %v578_v11 = vpop.f32.mrf.mxu0  ;;  %v346_v12 = vsel %vm275_vm0, %v344_v10, -inf }
  0xdb   : > { %347 = vmax.xlane.f32.xlu0 %v346_v12 }
  0xdc   : > { %v332_v13 = vpop.f32.mrf.mxu0 }
  0xde   : > { %v579_v14 = vpop.f32.mrf.mxu0 }
 0x164   : > { %v348_v17 = vpop.xlane.xlu0 %347 }
 0x165   : > { %v349_v18 = vmax.f32 %v345_v16, %v348_v17 }
 0x167   : > { %v350_v19 = vsub.f32 %v345_v16, %v349_v18  ;;  %426 = vst.msk [vmem:[#allocation2] sm:$0xff] %vm272_vm2, %v349_v18  ;;  %355 = vperm.xlu0 %614, %v349_v18  }
 0x169   : > { %v351_v26 = vmul.f32 1.442695, %v350_v19 }
 0x1e2   : > { %v356_v22 = vpop.permute.xlu0 %355 }
 0x1e3   : > { %v358_v23 = vsub.f32 %v344_v10, %v356_v22 }
 0x1e5   : > { %v359_v24 = vmul.f32 1.442695, %v358_v23 }
 0x1e7   : > { %616 = vpow2.f32 %v359_v24 }
 0x1e8   : > { %618 = vpow2.f32 %v351_v26 }
 0x1f4   : > { %v617_v25 = vpop.eup %616 }
 0x1f5   : > { %v363_v27 = vsel %vm275_vm0, %v617_v25, 0.0  ;;  %v376_v28 = vpack.c.bf16 %v617_v25, %v617_v25  ;;  %v619_v29 = vpop.eup %618 }
 0x1f6   : > { %364 = vadd.xlane.f32.xlu1 %v363_v27  ;;  %v362_v31 = vmul.f32 %v619_v29, %v361_v30 }
 0x1f7   : > { %583 = vmatmul.mubr.msk.bf16.vlgmr.msra.gmra.mxu1 %vm275_vm0, %v376_v28 }
 0x207   : > { %372 = vperm.xlu1 %615, %v619_v29  }
 0x27f   : > { %v365_v32 = vpop.xlane.xlu1 %364 }
 0x280   : > { %v366_v33 = vadd.f32 %v365_v32, %v362_v31 }
 0x282   : > { %368 = vst.msk [vmem:[#allocation3] sm:$0xff] %vm272_vm2, %v366_v33 }
 0x283   : > { %v373_v37 = vpop.permute.xlu1 %372 }
 0x284   : > { %v375_v38 = vmul.f32 %v373_v37, %v369_v36 }
 0x289   : > { %v430_v34 = vld [vmem:[#allocation3] sm:$0xff] }
 0x28a   : > { %620 = vrcp.f32 %v430_v34 }
 0x297   : > { %v621_v35 = vpop.eup %620 }
 0x298   : > { %435 = vperm.xlu1 %615, %v621_v35  }
 0x2b7   : > { %v418_v39 = vpop.f32.mrf.mxu1 }
 0x2b8   : > { %v424_v40 = vadd.f32 %v418_v39, %v375_v38 }
 0x2b9   : > { %v584_v41 = vpop.f32.mrf.mxu1 }
 0x2ba   : > { %425 = vst.msk [vmem:[#allocation4] sm:$0xff] %vm275_vm0, %v424_v40 }
 0x2bb   : > { %v421_v42 = vpop.f32.mrf.mxu1 }
 0x2bd   : > { %v585_v43 = vpop.f32.mrf.mxu1 }
 0x2c1   : > { %v432_v44 = vld [vmem:[#allocation4] sm:$0xff] }
 0x313   : > { %v436_v45 = vpop.permute.xlu1 %435 }
 0x314   : > { %v438_v46 = vmul.f32 %v436_v45, %v432_v44 }
 0x316   : > { %v439_v47 = vpack.c.bf16 %v438_v46, %v438_v46 }
 0x318   : > { %441 = vst.msk [vmem:[%s265_s28] sm:$0xf] %vm440_vm5, %v439_v47 }
 0x319 PF: > { %s13_s14 = sadd.s32 1, %s644_s14   ;;  %s730_s12 = smov %s640_s13 }
 0x31a   : > { %p10_p5 = scmp.ge.s32.totalorder %s13_s14, 10   ;;  %s731_s13 = smov %s733_s15 }
 0x31c   :  { %12 = sbr.rel (!%p10_p5) target bundleno = 2 (0x2), region = 80 }

// kernel: gpt_forward.15
= control target key start
LH: loop header
LB: loop body
LE: loop exit
PB: predicated region body
PF: predicated region fallthrough
CT: control target
= control target key end

     0   :  { %v143_v0 = vmov 0.0   ;;  %vm144_vm0 = vmmov 0   ;;  %vm48_vm1 = vcmask 261120   ;;  %vm107_vm2 = vcmask 257024   ;;  %s191_s1 = inlined_call_operand.vmem [shape: bf16[32,32], index: 1, kind: input, shape index: {}]   ;;  %s192_s0 = inlined_call_operand.vmem [shape: bf16[16,32], index: 0, kind: input, shape index: {}]   ;;  %s193_s3 = inlined_call_operand.vmem [shape: bf16[16,32], index: 3, kind: input, shape index: {}]   ;;  %s194_s2 = inlined_call_operand.vmem [shape: f32[1,32], index: 2, kind: input, shape index: {}]   ;;  %s195_s4 = inlined_call_operand.vmem [shape: bf16[16,32], index: 4, kind: output, shape index: {}]  }
   0x1   :  { %130 = vmatprep.subr.bf16.mxu0 %v143_v0  ;;  %v140_v1 = vld [vmem:[%s191_s1 + $0x8] sm:$0xff]   ;;  %134 = vmatprep.mubr.msk.bf16.mxu0 %vm144_vm0, %v143_v0  ;;  %v141_v2 = vld [vmem:[%s191_s1] sm:$0xff]  }
   0x2   :  { %131 = vmatpush3.bf16.msra.mxu0 %v140_v1  ;;  %v142_v3 = vld [vmem:[%s192_s0] sm:$0xff]  }
   0x3   :  { %132 = vmatprep.subr.bf16.mxu0 %v143_v0  ;;  %v124_v4 = vld [vmem:[%s193_s3] sm:$0xff]  }
   0x4   :  { %v114_v5 = vld [vmem:[%s194_s2] ss:$0 sm:$0xff]  ;;  %v125_v6 = vunpack.c.l.bf16 %v124_v4  ;;  %v126_v11 = vunpack.c.h.bf16 %v124_v4 }
   0x6   :  { %133 = vmatpush3.bf16.msra.mxu0 %v141_v2 }
   0x9   :  { %135 = vmatmul.mubr.msk.bf16.vlgmr.msra.gmra.mxu0 %vm48_vm1, %v142_v3 }
  0xc9   :  { %v86_v7 = vpop.f32.mrf.mxu0 }
  0xca   :  { %v87_v8 = vadd.f32 %v114_v5, %v86_v7 }
  0xcb   :  { %v136_v9 = vpop.f32.mrf.mxu0 }
  0xcc   :  { %v97_v10 = vadd.f32 %v125_v6, %v87_v8 }
  0xcd   :  { %v89_v12 = vpop.f32.mrf.mxu0 }
  0xce   :  { %v121_v13 = vpack.c.bf16 %v97_v10, %v97_v10  ;;  %v90_v14 = vadd.f32 %v114_v5, %v89_v12 }
  0xcf   :  { %v137_v15 = vpop.f32.mrf.mxu0 }
  0xd0   :  { %108 = vst.msk [vmem:[%s195_s4] sm:$0xf] %vm107_vm2, %v121_v13  ;;  %v98_v16 = vadd.f32 %v126_v11, %v90_v14 }
  0xd2   :  { %v122_v17 = vpack.c.bf16 %v98_v16, %v98_v16 }
  0xd4   :  { %109 = vst.msk [vmem:[%s195_s4 + $0x4] sm:$0xf] %vm107_vm2, %v122_v17 }

// kernel: gpt_forward.17
= control target key start
LH: loop header
LB: loop body
LE: loop exit
PB: predicated region body
PF: predicated region fallthrough
CT: control target
= control target key end

     0   :  { %v217_v0 = vmov 0.0   ;;  %vm218_vm0 = vmmov 0   ;;  %vm152_vm1 = vcmask 257024   ;;  %s283_s1 = inlined_call_operand.vmem [shape: bf16[128,32], index: 1, kind: input, shape index: {}]   ;;  %s284_s0 = inlined_call_operand.vmem [shape: bf16[16,128], index: 0, kind: input, shape index: {}]   ;;  %s285_s3 = inlined_call_operand.vmem [shape: bf16[16,32], index: 3, kind: input, shape index: {}]   ;;  %s286_s2 = inlined_call_operand.vmem [shape: f32[1,32], index: 2, kind: input, shape index: {}]   ;;  %s287_s4 = inlined_call_operand.vmem [shape: bf16[16,32], index: 4, kind: output, shape index: {}]  }
   0x1   :  { %186 = vmatprep.subr.bf16.mxu0 %v217_v0  ;;  %v208_v1 = vld [vmem:[%s283_s1 + $0x38] sm:$0xff]   ;;  %202 = vmatprep.mubr.msk.bf16.mxu0 %vm218_vm0, %v217_v0  ;;  %v209_v2 = vld [vmem:[%s283_s1 + $0x30] sm:$0xff]   ;;  %v210_v3 = vld [vmem:[%s283_s1 + $0x28] sm:$0xff]  }
   0x2   :  { %187 = vmatpush3.bf16.msra.mxu0 %v208_v1  ;;  %v211_v4 = vld [vmem:[%s283_s1 + $0x20] sm:$0xff]   ;;  %v212_v5 = vld [vmem:[%s283_s1 + $0x18] sm:$0xff]   ;;  %v213_v6 = vld [vmem:[%s283_s1 + $0x10] sm:$0xff]  }
   0x3   :  { %188 = vmatprep.subr.bf16.mxu0 %v217_v0  ;;  %v214_v7 = vld [vmem:[%s283_s1 + $0x8] sm:$0xff]   ;;  %v215_v8 = vld [vmem:[%s283_s1] sm:$0xff]  }
   0x4   :  { %v216_v9 = vld [vmem:[%s284_s0] sm:$0xff]  }
   0x5   :  { %v174_v10 = vld [vmem:[%s285_s3] sm:$0xff]  }
   0x6   :  { %189 = vmatpush3.bf16.msra.mxu0 %v209_v2  ;;  %v159_v11 = vld [vmem:[%s286_s2] ss:$0 sm:$0xff]  ;;  %v175_v12 = vunpack.c.l.bf16 %v174_v10  ;;  %v176_v17 = vunpack.c.h.bf16 %v174_v10 }
   0x7   :  { %190 = vmatprep.subr.bf16.mxu0 %v217_v0 }
   0xa   :  { %191 = vmatpush3.bf16.msra.mxu0 %v210_v3 }
   0xb   :  { %192 = vmatprep.subr.bf16.mxu0 %v217_v0 }
   0xe   :  { %193 = vmatpush3.bf16.msra.mxu0 %v211_v4 }
   0xf   :  { %194 = vmatprep.subr.bf16.mxu0 %v217_v0 }
  0x12   :  { %195 = vmatpush3.bf16.msra.mxu0 %v212_v5 }
  0x13   :  { %196 = vmatprep.subr.bf16.mxu0 %v217_v0 }
  0x16   :  { %197 = vmatpush3.bf16.msra.mxu0 %v213_v6 }
  0x17   :  { %198 = vmatprep.subr.bf16.mxu0 %v217_v0 }
  0x1a   :  { %199 = vmatpush3.bf16.msra.mxu0 %v214_v7 }
  0x1b   :  { %200 = vmatprep.subr.bf16.mxu0 %v217_v0 }
  0x1e   :  { %201 = vmatpush3.bf16.msra.mxu0 %v215_v8 }
  0x21   :  { %203 = vmatmul.mubr.bf16.vlgmr.msra.gmra.mxu0 %v216_v9 }
  0xe1   :  { %v131_v13 = vpop.f32.mrf.mxu0 }
  0xe2   :  { %v132_v14 = vadd.f32 %v159_v11, %v131_v13 }
  0xe3   :  { %v204_v15 = vpop.f32.mrf.mxu0 }
  0xe4   :  { %v142_v16 = vadd.f32 %v175_v12, %v132_v14 }
  0xe5   :  { %v134_v18 = vpop.f32.mrf.mxu0 }
  0xe6   :  { %v171_v19 = vpack.c.bf16 %v142_v16, %v142_v16  ;;  %v135_v20 = vadd.f32 %v159_v11, %v134_v18 }
  0xe7   :  { %v205_v21 = vpop.f32.mrf.mxu0 }
  0xe8   :  { %153 = vst.msk [vmem:[%s287_s4] sm:$0xf] %vm152_vm1, %v171_v19  ;;  %v143_v22 = vadd.f32 %v176_v17, %v135_v20 }
  0xea   :  { %v172_v23 = vpack.c.bf16 %v143_v22, %v143_v22 }
  0xec   :  { %154 = vst.msk [vmem:[%s287_s4 + $0x4] sm:$0xf] %vm152_vm1, %v172_v23 }

// kernel: gpt_forward.16
= control target key start
LH: loop header
LB: loop body
LE: loop exit
PB: predicated region body
PF: predicated region fallthrough
CT: control target
= control target key end

     0   :  { %vm29_vm0 = vcmask 261120   ;;  %v241_v16 = vmov 0.0   ;;  %vm242_vm1 = vmmov 0   ;;  %vm83_vm2 = vcmask 257024   ;;  %s299_s0 = inlined_call_operand.vmem [shape: bf16[16,32], index: 0, kind: input, shape index: {}]   ;;  %s300_s1 = inlined_call_operand.vmem [shape: bf16[32,128], index: 1, kind: input, shape index: {}]   ;;  %s301_s3 = inlined_call_operand.vmem [shape: f32[1,32], index: 3, kind: input, shape index: {}]   ;;  %s302_s4 = inlined_call_operand.vmem [shape: f32[1,32], index: 4, kind: input, shape index: {}]   ;;  %s303_s2 = inlined_call_operand.vmem [shape: f32[1,128], index: 2, kind: input, shape index: {}]   ;;  %s304_s5 = inlined_call_operand.vmem [shape: bf16[16,128], index: 5, kind: output, shape index: {}]  }
   0x1   :  { %v209_v0 = vld [vmem:[%s299_s0] sm:$0xff]   ;;  %v230_v15 = vld [vmem:[%s300_s1 + $0x8] sm:$0xff]   ;;  %220 = vmatprep.subr.bf16.mxu0 %v241_v16  ;;  %224 = vmatprep.mubr.msk.bf16.mxu0 %vm242_vm1, %v241_v16 }
   0x2   :  { %v210_v1 = vunpack.c.l.bf16 %v209_v0  ;;  %v211_v2 = vunpack.c.h.bf16 %v209_v0  ;;  %221 = vmatpush3.bf16.msra.mxu0 %v230_v15  ;;  %v231_v17 = vld [vmem:[%s300_s1] sm:$0xff]  }
   0x3   :  { %222 = vmatprep.subr.bf16.mxu0 %v241_v16  ;;  %v193_v25 = vld [vmem:[%s301_s3] ss:$0 sm:$0xff] }
   0x4   :  { %v30_v3 = vsel %vm29_vm0, %v210_v1, 0.0  ;;  %v33_v4 = vsel %vm29_vm0, %v211_v2, 0.0  ;;  %v194_v27 = vld [vmem:[%s302_s4] ss:$0 sm:$0xff] }
   0x5   :  { %31 = vadd.xlane.f32.xlu0 %v30_v3  ;;  %v197_v37 = vld [vmem:[%s303_s2] ss:$0 sm:$0xff] }
   0x6   :  { %223 = vmatpush3.bf16.msra.mxu0 %v231_v17 }
   0x9   :  { %34 = vadd.xlane.f32.xlu0 %v33_v4 }
  0x8e   :  { %v32_v5 = vpop.xlane.xlu0 %31 }
  0x8f   :  { %v37_v6 = vmul.f32 0.03125, %v32_v5 }
  0x91   :  { %v39_v7 = vsub.f32 %v210_v1, %v37_v6 }
  0x92   :  { %v35_v8 = vpop.xlane.xlu0 %34 }
  0x93   :  { %v38_v9 = vmul.f32 0.03125, %v35_v8  ;;  %v41_v10 = vmul.f32 %v39_v7, %v39_v7 }
  0x95   :  { %v40_v11 = vsub.f32 %v211_v2, %v38_v9  ;;  %v43_v12 = vsel %vm29_vm0, %v41_v10, 0.0 }
  0x96   :  { %44 = vadd.xlane.f32.xlu1 %v43_v12 }
  0x97   :  { %v42_v13 = vmul.f32 %v40_v11, %v40_v11 }
  0x99   :  { %v46_v14 = vsel %vm29_vm0, %v42_v13, 0.0 }
  0x9a   :  { %47 = vadd.xlane.f32.xlu1 %v46_v14 }
 0x11f   :  { %v45_v18 = vpop.xlane.xlu1 %44 }
 0x120   :  { %v49_v19 = vmul.f32 0.03125, %v45_v18 }
 0x122   :  { %v51_v20 = vadd.f32 1e-05, %v49_v19 }
 0x123   :  { %v48_v21 = vpop.xlane.xlu1 %47 }
 0x124   :  { %233 = vrsqrt.f32 %v51_v20  ;;  %v50_v22 = vmul.f32 0.03125, %v48_v21 }
 0x126   :  { %v52_v23 = vadd.f32 1e-05, %v50_v22 }
 0x128   :  { %235 = vrsqrt.f32 %v52_v23 }
 0x131   :  { %v234_v24 = vpop.eup %233 }
 0x132   :  { %v55_v26 = vmul.f32 %v234_v24, %v39_v7 }
 0x134   :  { %v64_v28 = vmul.f32 %v193_v25, %v55_v26 }
 0x135   :  { %v236_v29 = vpop.eup %235 }
 0x136   :  { %v73_v30 = vadd.f32 %v194_v27, %v64_v28  ;;  %v56_v31 = vmul.f32 %v236_v29, %v40_v11 }
 0x138   :  { %v204_v32 = vpack.c.bf16 %v73_v30, %v73_v30  ;;  %v65_v33 = vmul.f32 %v193_v25, %v56_v31 }
 0x13a   :  { %84 = vst.msk [vmem:[#allocation2] sm:$0xf] %vm83_vm2, %v204_v32  ;;  %v74_v34 = vadd.f32 %v194_v27, %v65_v33 }
 0x13c   :  { %v205_v35 = vpack.c.bf16 %v74_v34, %v74_v34 }
 0x13e   :  { %85 = vst.msk [vmem:[#allocation2 + $0x4] sm:$0xf] %vm83_vm2, %v205_v35 }
 0x145   :  { %v232_v36 = vld [vmem:[#allocation2] sm:$0xff]  }
 0x146   :  { %225 = vmatmul.mubr.msk.bf16.vlgmr.msra.gmra.mxu0 %vm29_vm0, %v232_v36 }
 0x206   :  { %v154_v38 = vpop.f32.mrf.mxu0 }
 0x207   :  { %v155_v39 = vadd.f32 %v197_v37, %v154_v38 }
 0x208   :  { %v226_v40 = vpop.f32.mrf.mxu0 }
 0x209   :  { %v161_v41 = vmul.f32 %v155_v39, %v155_v39 }
 0x20a   :  { %v157_v42 = vpop.f32.mrf.mxu0 }
 0x20b   :  { %v163_v43 = vmul.f32 %v161_v41, %v155_v39  ;;  %v158_v44 = vadd.f32 %v197_v37, %v157_v42 }
 0x20c   :  { %v227_v45 = vpop.f32.mrf.mxu0 }
 0x20d   :  { %v165_v46 = vmul.f32 0.044715, %v163_v43  ;;  %v162_v47 = vmul.f32 %v158_v44, %v158_v44 }
 0x20f   :  { %v167_v48 = vadd.f32 %v165_v46, %v155_v39  ;;  %v164_v49 = vmul.f32 %v162_v47, %v158_v44 }
 0x211   :  { %v169_v50 = vmul.f32 0.7978846, %v167_v48  ;;  %v166_v51 = vmul.f32 0.044715, %v164_v49 }
 0x213   :  { %237 = vtanh.f32 %v169_v50  ;;  %v168_v52 = vadd.f32 %v166_v51, %v158_v44 }
 0x215   :  { %v170_v53 = vmul.f32 0.7978846, %v168_v52 }
 0x217   :  { %239 = vtanh.f32 %v170_v53 }
 0x220   :  { %v238_v54 = vpop.eup %237 }
 0x221   :  { %v173_v55 = vadd.f32 1.0, %v238_v54 }
 0x223   :  { %v175_v57 = vmul.f32 0.5, %v173_v55 }
 0x224   :  { %v240_v56 = vpop.eup %239 }
 0x225   :  { %v174_v58 = vadd.f32 1.0, %v240_v56  ;;  %v177_v60 = vmul.f32 %v175_v57, %v155_v39 }
 0x227   :  { %v176_v59 = vmul.f32 0.5, %v174_v58 }
 0x229   :  { %v178_v61 = vmul.f32 %v176_v59, %v158_v44 }
 0x22b   :  { %v215_v62 = vpack.c.bf16 %v178_v61, %v177_v60 }
 0x22d   :  { %216 = vst [vmem:[%s304_s5] sm:$0xff] %v215_v62  }

// kernel: gpt_forward.23
= control target key start
LH: loop header
LB: loop body
LE: loop exit
PB: predicated region body
PF: predicated region fallthrough
CT: control target
= control target key end

     0   :  { %vm30_vm0 = vcmask 261120   ;;  %s302_s0 = inlined_call_operand.vmem [shape: bf16[16,32], index: 0, kind: input, shape index: {}]   ;;  %s303_s1 = inlined_call_operand.vmem [shape: bf16[32,64], index: 1, kind: input, shape index: {}]   ;;  %s304_s2 = inlined_call_operand.vmem [shape: f32[1,64], index: 2, kind: input, shape index: {}]   ;;  %s305_s3 = inlined_call_operand.vmem [shape: f32[1,32], index: 3, kind: input, shape index: {}]   ;;  %s306_s4 = inlined_call_operand.vmem [shape: f32[1,32], index: 4, kind: input, shape index: {}]   ;;  %s307_s5 = inlined_call_operand.hbm [shape: f32[16,64], index: 5, kind: output, shape index: {}]  }
   0x1   :  { %v193_v0 = vld [vmem:[%s302_s0] sm:$0xff]  }
   0x2   :  { %v194_v1 = vunpack.c.l.bf16 %v193_v0  ;;  %v195_v2 = vunpack.c.h.bf16 %v193_v0 }
   0x3   :  { %10 = vsyncpa [#allocation4], 0  ;;  %v212_v15 = vld [vmem:[%s303_s1 + $0x8] sm:$0xff]   ;;  %v241_v16 = vmov 0.0   ;;  %vm242_vm1 = vmmov 0   ;;  %v213_v17 = vld [vmem:[%s303_s1] sm:$0xff]  }
   0x4   :  { %v31_v3 = vsel %vm30_vm0, %v194_v1, 0.0  ;;  %v34_v4 = vsel %vm30_vm0, %v195_v2, 0.0  ;;  %199 = vmatprep.subr.bf16.mxu0 %v241_v16  ;;  %203 = vmatprep.mubr.msk.bf16.mxu0 %vm242_vm1, %v241_v16  ;;  %v181_v25 = vld [vmem:[%s305_s3] ss:$0 sm:$0xff]  ;;  %vm84_vm2 = vcmask 257024   ;;  %vm162_vm3 = vcmask 523264  }
   0x5   :  { %32 = vadd.xlane.f32.xlu0 %v31_v3  ;;  %200 = vmatpush3.bf16.msra.mxu0 %v212_v15  ;;  %v182_v27 = vld [vmem:[%s306_s4] ss:$0 sm:$0xff]  ;;  %s243_s4 = smov [#allocation3]  }
   0x6   :  { %201 = vmatprep.subr.bf16.mxu0 %v241_v16  ;;  %v185_v37 = vld [vmem:[%s304_s2] ss:$0 sm:$0xff]  ;;  %s170_s27 = sshll.u32 %s243_s4, 4  ;;  %s171_s27 = int_to_ptr.vmem [resolvable:$true] %s170_s27 }
   0x7   :  { %s219_s28 = scalar_lea.vmem %s171_s27, 256  ;;  %p224_p1 = scmp.lt.s32.totalorder %s171_s27, %s171_s27 }
   0x8   :  { %p220_p0 = scmp.ne.s32.totalorder %s171_s27, %s219_s28  ;;  %p225_p2 = scmp.lt.s32.totalorder %s219_s28, %s219_s28 }
   0x9   :  { %35 = vadd.xlane.f32.xlu0 %v34_v4  ;;  %202 = vmatpush3.bf16.msra.mxu0 %v213_v17 }
   0xa   :  { %p226_p3 = por %p225_p2, %p224_p1 }
   0xc   :  { %p227_p4 = pnand %p226_p3, %p220_p0 }
  0x8e   :  { %v33_v5 = vpop.xlane.xlu0 %32 }
  0x8f   :  { %v38_v6 = vmul.f32 0.03125, %v33_v5 }
  0x91   :  { %v40_v7 = vsub.f32 %v194_v1, %v38_v6 }
  0x92   :  { %v36_v8 = vpop.xlane.xlu0 %35 }
  0x93   :  { %v39_v9 = vmul.f32 0.03125, %v36_v8  ;;  %v42_v10 = vmul.f32 %v40_v7, %v40_v7 }
  0x95   :  { %v41_v11 = vsub.f32 %v195_v2, %v39_v9  ;;  %v44_v12 = vsel %vm30_vm0, %v42_v10, 0.0 }
  0x96   :  { %45 = vadd.xlane.f32.xlu1 %v44_v12 }
  0x97   :  { %v43_v13 = vmul.f32 %v41_v11, %v41_v11 }
  0x99   :  { %v47_v14 = vsel %vm30_vm0, %v43_v13, 0.0 }
  0x9a   :  { %48 = vadd.xlane.f32.xlu1 %v47_v14 }
 0x11f   :  { %v46_v18 = vpop.xlane.xlu1 %45 }
 0x120   :  { %v50_v19 = vmul.f32 0.03125, %v46_v18 }
 0x122   :  { %v52_v20 = vadd.f32 1e-05, %v50_v19 }
 0x123   :  { %v49_v21 = vpop.xlane.xlu1 %48 }
 0x124   :  { %215 = vrsqrt.f32 %v52_v20  ;;  %v51_v22 = vmul.f32 0.03125, %v49_v21 }
 0x126   :  { %v53_v23 = vadd.f32 1e-05, %v51_v22 }
 0x128   :  { %217 = vrsqrt.f32 %v53_v23 }
 0x131   :  { %v216_v24 = vpop.eup %215 }
 0x132   :  { %v56_v26 = vmul.f32 %v216_v24, %v40_v7 }
 0x134   :  { %v65_v28 = vmul.f32 %v181_v25, %v56_v26 }
 0x135   :  { %v218_v29 = vpop.eup %217 }
 0x136   :  { %v74_v30 = vadd.f32 %v182_v27, %v65_v28  ;;  %v57_v31 = vmul.f32 %v218_v29, %v41_v11 }
 0x138   :  { %v190_v32 = vpack.c.bf16 %v74_v30, %v74_v30  ;;  %v66_v33 = vmul.f32 %v181_v25, %v57_v31 }
 0x13a   :  { %85 = vst.msk [vmem:[#allocation2] sm:$0xf] %vm84_vm2, %v190_v32  ;;  %v75_v34 = vadd.f32 %v182_v27, %v66_v33 }
 0x13c   :  { %v191_v35 = vpack.c.bf16 %v75_v34, %v75_v34 }
 0x13e   :  { %86 = vst.msk [vmem:[#allocation2 + $0x4] sm:$0xf] %vm84_vm2, %v191_v35 }
 0x145   :  { %v214_v36 = vld [vmem:[#allocation2] sm:$0xff]  }
 0x146   :  { %204 = vmatmul.mubr.msk.bf16.vlgmr.msra.gmra.mxu0 %vm30_vm0, %v214_v36 }
 0x206   :  { %v155_v38 = vpop.f32.mrf.mxu0 }
 0x207   :  { %v156_v39 = vadd.f32 %v185_v37, %v155_v38 }
 0x208   :  { %v205_v40 = vpop.f32.mrf.mxu0 }
 0x209   :  { %163 = vst.msk [vmem:[#allocation3] sm:$0xff] %vm162_vm3, %v156_v39 }
 0x20a   :  { %v158_v41 = vpop.f32.mrf.mxu0 }
 0x20b   :  { %v159_v42 = vadd.f32 %v185_v37, %v158_v41 }
 0x20c   :  { %v206_v43 = vpop.f32.mrf.mxu0 }
 0x20d   :  { %164 = vst.msk [vmem:[#allocation3 + $0x8] sm:$0xff] %vm162_vm3, %v159_v42 }
 0x20e   :  { %230 = shalt.err (!%p227_p4)
}
 0x20f   :  { %s244_s2 = smov 128   ;;  %s245_s29 = smov 8  }
 0x210   :  { %176 = dma.vmem_to_hbm [thread:$0]  %s171_s27, 256, %s307_s5, [#allocation4], %s244_s2, %s244_s2, %s245_s29  }
 0x211   :  { %239 = dma.done.wait [#allocation4], 256  }
 0x212   :  { %240 = vsyncadd [#allocation4], 4294967040 }
 0x213   :  { %180 = vsyncpa [#allocation4], 1 }

</bundles_post_ra>
